<compile_context>
chip_gen: v7x
topology: tpu7x:2x2x1
jax: 0.10.0
libtpu: 0.0.40
codegen_flags: <defaults>
</compile_context>

<pallas_src>
import functools

import jax
import jax.numpy as jnp
from jax import lax
from jax.experimental import pallas as pl
from jax.experimental.pallas import tpu as pltpu


OUT_LANES = 128  # lane-dense packed output width (action in lane 0, logp in lane 1)


def _round_up(x, m):
    return ((x + m - 1) // m) * m


def _layernorm(x, gamma, beta, eps=1e-5):
    mu = jnp.mean(x, axis=-1, keepdims=True)
    var = jnp.mean((x - mu) ** 2, axis=-1, keepdims=True)
    return (x - mu) * lax.rsqrt(var + eps) * gamma + beta


def actor_kernel(
    # per-batch-tile data
    obs_ref, h_ref, mask_ref, avail_ref,
    # MLP params (resident)
    w1_ref, b1_ref, g1_ref, be1_ref,
    w2_ref, b2_ref, g2_ref, be2_ref,
    # GRU params, per-gate (resident)
    wir_ref, wiz_ref, win_ref,
    whr_ref, whz_ref, whn_ref,
    br_ref, bz_ref, bin_ref, bhn_ref,
    gg_ref, gb_ref,
    # Act layer params (resident)
    wa_ref, ba_ref,
    # outputs
    packed_out_ref, hout_ref,
):
    A = avail_ref.shape[-1]

    # ---------------- MLP: 2 x (Linear -> ReLU -> LayerNorm) ----------------
    x = obs_ref[...]
    x = jnp.dot(x, w1_ref[...], preferred_element_type=jnp.float32) + b1_ref[...]
    x = jnp.maximum(x, 0.0)
    x = _layernorm(x, g1_ref[...], be1_ref[...])

    x = jnp.dot(x, w2_ref[...], preferred_element_type=jnp.float32) + b2_ref[...]
    x = jnp.maximum(x, 0.0)
    x = _layernorm(x, g2_ref[...], be2_ref[...])

    # ---------------- single-step GRU with mask reset ----------------
    # Per-gate dots -> each result is a full (TB, H) block, no lane slicing.
    h = h_ref[...] * mask_ref[...]                          # (TB,H) * (TB,1)
    r = jax.nn.sigmoid(
        jnp.dot(x, wir_ref[...], preferred_element_type=jnp.float32)
        + jnp.dot(h, whr_ref[...], preferred_element_type=jnp.float32)
        + br_ref[...]
    )
    z = jax.nn.sigmoid(
        jnp.dot(x, wiz_ref[...], preferred_element_type=jnp.float32)
        + jnp.dot(h, whz_ref[...], preferred_element_type=jnp.float32)
        + bz_ref[...]
    )
    n = jnp.tanh(
        jnp.dot(x, win_ref[...], preferred_element_type=jnp.float32)
        + bin_ref[...]
        + r * (jnp.dot(h, whn_ref[...], preferred_element_type=jnp.float32)
               + bhn_ref[...])
    )
    h_new = (1.0 - z) * n + z * h
    hout_ref[...] = h_new                                   # pre-norm h returned

    feat = _layernorm(h_new, gg_ref[...], gb_ref[...])

    # -------- Act layer (Categorical, deterministic -> argmax + logprob) --------
    logits = jnp.dot(feat, wa_ref[...], preferred_element_type=jnp.float32) + ba_ref[...]
    logits = jnp.where(avail_ref[...] > 0.5, logits, -1e10)

    lmax = jnp.max(logits, axis=-1, keepdims=True)
    lse = lmax + jnp.log(jnp.sum(jnp.exp(logits - lmax), axis=-1, keepdims=True))
    logp_all = logits - lse

    iota = lax.broadcasted_iota(jnp.int32, logits.shape, 1)
    # first index attaining the max (matches torch.argmax tie-break)
    action = jnp.min(jnp.where(logits >= lmax, iota, A), axis=-1, keepdims=True)
    logp = jnp.sum(jnp.where(iota == action, logp_all, 0.0), axis=-1, keepdims=True)

    # Lane-dense packed output: lane 0 = action (as f32), lane 1 = logp.
    out_iota = lax.broadcasted_iota(jnp.int32, packed_out_ref.shape, 1)
    packed = jnp.where(out_iota == 0, action.astype(jnp.float32),
                       jnp.where(out_iota == 1, logp, 0.0))
    packed_out_ref[...] = packed
    # TODO(synk): stochastic (deterministic=False) categorical sampling would need
    # in-kernel PRNG (pltpu.prng_seed + Gumbel-max); only the argmax path is here.


def actor_forward(params, obs, rnn_states, masks, available_actions,
                  deterministic=True, block_b=256):
    assert deterministic, "only deterministic (argmax) path implemented"
    B, OBS = obs.shape
    H = params["w2"].shape[1]
    A = params["wa"].shape[1]

    # Batch tile: sublane-aligned, capped at block_b; pad batch to a multiple.
    TB = min(block_b, _round_up(B, 8))
    B_pad = _round_up(B, TB)
    if B_pad != B:
        pad = B_pad - B
        obs = jnp.pad(obs, ((0, pad), (0, 0)))
        rnn_states = jnp.pad(rnn_states, ((0, pad), (0, 0)))
        masks = jnp.pad(masks, ((0, pad), (0, 0)))
        available_actions = jnp.pad(available_actions, ((0, pad), (0, 0)),
                                    constant_values=1.0)

    grid = (B_pad // TB,)

    def batch_spec(feat):
        return pl.BlockSpec((TB, feat), lambda i: (i, 0))

    def resident_spec(arr):
        return pl.BlockSpec(arr.shape, lambda i: (0, 0))

    weight_names = [
        "w1", "b1", "g1", "be1",
        "w2", "b2", "g2", "be2",
        "wir", "wiz", "win", "whr", "whz", "whn",
        "br", "bz", "bin", "bhn",
        "gg", "gb",
        "wa", "ba",
    ]
    weights = [params[k] for k in weight_names]

    inputs = (obs, rnn_states, masks, available_actions, *weights)
    in_specs = [batch_spec(OBS), batch_spec(H), batch_spec(1), batch_spec(A)]
    in_specs += [resident_spec(w) for w in weights]

    out_shape = (
        jax.ShapeDtypeStruct((B_pad, OUT_LANES), jnp.float32),
        jax.ShapeDtypeStruct((B_pad, H), jnp.float32),
    )
    out_specs = (batch_spec(OUT_LANES), batch_spec(H))

    flops = 2 * B_pad * (OBS * H + 7 * H * H + H * A)
    transcendentals = B_pad * (3 * H + A + 3)
    bytes_accessed = 4 * (sum(int(a.size) for a in inputs)
                          + B_pad * (OUT_LANES + H))

    packed, new_rnn_states = pl.pallas_call(
        actor_kernel,
        grid=grid,
        in_specs=in_specs,
        out_specs=out_specs,
        out_shape=out_shape,
        compiler_params=pltpu.CompilerParams(
            dimension_semantics=("parallel",),   # megacore split on v7x
            vmem_limit_bytes=32 * 1024 * 1024,   # sized for v7x's 64 MiB VMEM
        ),
        cost_estimate=pl.CostEstimate(
            flops=flops,
            transcendentals=transcendentals,
            bytes_accessed=bytes_accessed,
        ),
    )(*inputs)

    actions = packed[:B, 0:1].astype(jnp.int32)
    log_probs = packed[:B, 1:2]
    return actions, log_probs, new_rnn_states[:B]


def make_params(key, obs_dim, hidden_dim, act_dim):
    ks = jax.random.split(key, 10)
    s = 0.1
    f32 = jnp.float32
    H = hidden_dim
    return dict(
        # MLP layer 1
        w1=jax.random.normal(ks[0], (obs_dim, H), f32) * s,
        b1=jnp.zeros((1, H), f32),
        g1=jnp.ones((1, H), f32),
        be1=jnp.zeros((1, H), f32),
        # MLP layer 2
        w2=jax.random.normal(ks[1], (H, H), f32) * s,
        b2=jnp.zeros((1, H), f32),
        g2=jnp.ones((1, H), f32),
        be2=jnp.zeros((1, H), f32),
        # GRU, per-gate (PyTorch gate order r, z, n).
        # br/bz hold the combined (b_ir+b_hr)/(b_iz+b_hz); bin/bhn stay separate
        # because n = tanh(W_in x + b_in + r * (W_hn h + b_hn)).
        wir=jax.random.normal(ks[2], (H, H), f32) * s,
        wiz=jax.random.normal(ks[3], (H, H), f32) * s,
        win=jax.random.normal(ks[4], (H, H), f32) * s,
        whr=jax.random.normal(ks[5], (H, H), f32) * s,
        whz=jax.random.normal(ks[6], (H, H), f32) * s,
        whn=jax.random.normal(ks[7], (H, H), f32) * s,
        br=jnp.zeros((1, H), f32),
        bz=jnp.zeros((1, H), f32),
        bin=jnp.zeros((1, H), f32),
        bhn=jnp.zeros((1, H), f32),
        gg=jnp.ones((1, H), f32),
        gb=jnp.zeros((1, H), f32),
        # Act layer
        wa=jax.random.normal(ks[8], (H, act_dim), f32) * s,
        ba=jnp.zeros((1, act_dim), f32),
    )


if __name__ == "__main__":
    B, OBS, HID, ACT = 4, 12, 32, 5
    key = jax.random.PRNGKey(0)
    k_obs, k_h, k_p = jax.random.split(key, 3)

    obs = jax.random.normal(k_obs, (B, OBS), jnp.float32)
    rnn_states = jax.random.normal(k_h, (B, HID), jnp.float32)
    masks = jnp.array([[1.0], [1.0], [0.0], [1.0]], jnp.float32)
    available_actions = (
        jnp.ones((B, ACT), jnp.float32).at[0, 0].set(0.0).at[2, 3].set(0.0)
    )

    params = make_params(k_p, OBS, HID, ACT)

    actions, log_probs, new_states = actor_forward(
        params, obs, rnn_states, masks, available_actions, deterministic=True
    )
    jax.block_until_ready((actions, log_probs, new_states))
    assert actions.shape == (B, 1) and log_probs.shape == (B, 1)
    assert new_states.shape == (B, HID)
    print("KERNEL_OK")
</pallas_src>

<mosaic_0001>
module attributes {stable_mosaic.version = 11 : i64} {
  func.func @actor_kernel(%arg0: i32, %arg1: memref<8x12xf32, #tpu.memory_space<vmem>>, %arg2: memref<8x32xf32, #tpu.memory_space<vmem>>, %arg3: memref<8x1xf32, #tpu.memory_space<vmem>>, %arg4: memref<8x5xf32, #tpu.memory_space<vmem>>, %arg5: memref<12x32xf32, #tpu.memory_space<vmem>>, %arg6: memref<1x32xf32, #tpu.memory_space<vmem>>, %arg7: memref<1x32xf32, #tpu.memory_space<vmem>>, %arg8: memref<1x32xf32, #tpu.memory_space<vmem>>, %arg9: memref<32x32xf32, #tpu.memory_space<vmem>>, %arg10: memref<1x32xf32, #tpu.memory_space<vmem>>, %arg11: memref<1x32xf32, #tpu.memory_space<vmem>>, %arg12: memref<1x32xf32, #tpu.memory_space<vmem>>, %arg13: memref<32x32xf32, #tpu.memory_space<vmem>>, %arg14: memref<32x32xf32, #tpu.memory_space<vmem>>, %arg15: memref<32x32xf32, #tpu.memory_space<vmem>>, %arg16: memref<32x32xf32, #tpu.memory_space<vmem>>, %arg17: memref<32x32xf32, #tpu.memory_space<vmem>>, %arg18: memref<32x32xf32, #tpu.memory_space<vmem>>, %arg19: memref<1x32xf32, #tpu.memory_space<vmem>>, %arg20: memref<1x32xf32, #tpu.memory_space<vmem>>, %arg21: memref<1x32xf32, #tpu.memory_space<vmem>>, %arg22: memref<1x32xf32, #tpu.memory_space<vmem>>, %arg23: memref<1x32xf32, #tpu.memory_space<vmem>>, %arg24: memref<1x32xf32, #tpu.memory_space<vmem>>, %arg25: memref<32x5xf32, #tpu.memory_space<vmem>>, %arg26: memref<1x5xf32, #tpu.memory_space<vmem>>, %arg27: memref<8x128xf32, #tpu.memory_space<vmem>>, %arg28: memref<8x32xf32, #tpu.memory_space<vmem>>) attributes {dimension_semantics = [#tpu.dimension_semantics<parallel>], iteration_bounds = array<i64: 1>, scalar_prefetch = 0 : i64, scratch_operands = 0 : i64, tpu.core_type = #tpu.core_type<tc>, window_params = [{transform_indices = @transform_0, window_bounds = array<i64: 8, 12>}, {transform_indices = @transform_1, window_bounds = array<i64: 8, 32>}, {transform_indices = @transform_2, window_bounds = array<i64: 8, 1>}, {transform_indices = @transform_3, window_bounds = array<i64: 8, 5>}, {pipeline_mode = #tpu.pipeline_mode<synchronous>, transform_indices = @transform_4, window_bounds = array<i64: 12, 32>}, {pipeline_mode = #tpu.pipeline_mode<synchronous>, transform_indices = @transform_5, window_bounds = array<i64: 1, 32>}, {pipeline_mode = #tpu.pipeline_mode<synchronous>, transform_indices = @transform_6, window_bounds = array<i64: 1, 32>}, {pipeline_mode = #tpu.pipeline_mode<synchronous>, transform_indices = @transform_7, window_bounds = array<i64: 1, 32>}, {pipeline_mode = #tpu.pipeline_mode<synchronous>, transform_indices = @transform_8, window_bounds = array<i64: 32, 32>}, {pipeline_mode = #tpu.pipeline_mode<synchronous>, transform_indices = @transform_9, window_bounds = array<i64: 1, 32>}, {pipeline_mode = #tpu.pipeline_mode<synchronous>, transform_indices = @transform_10, window_bounds = array<i64: 1, 32>}, {pipeline_mode = #tpu.pipeline_mode<synchronous>, transform_indices = @transform_11, window_bounds = array<i64: 1, 32>}, {pipeline_mode = #tpu.pipeline_mode<synchronous>, transform_indices = @transform_12, window_bounds = array<i64: 32, 32>}, {pipeline_mode = #tpu.pipeline_mode<synchronous>, transform_indices = @transform_13, window_bounds = array<i64: 32, 32>}, {pipeline_mode = #tpu.pipeline_mode<synchronous>, transform_indices = @transform_14, window_bounds = array<i64: 32, 32>}, {pipeline_mode = #tpu.pipeline_mode<synchronous>, transform_indices = @transform_15, window_bounds = array<i64: 32, 32>}, {pipeline_mode = #tpu.pipeline_mode<synchronous>, transform_indices = @transform_16, window_bounds = array<i64: 32, 32>}, {pipeline_mode = #tpu.pipeline_mode<synchronous>, transform_indices = @transform_17, window_bounds = array<i64: 32, 32>}, {pipeline_mode = #tpu.pipeline_mode<synchronous>, transform_indices = @transform_18, window_bounds = array<i64: 1, 32>}, {pipeline_mode = #tpu.pipeline_mode<synchronous>, transform_indices = @transform_19, window_bounds = array<i64: 1, 32>}, {pipeline_mode = #tpu.pipeline_mode<synchronous>, transform_indices = @transform_20, window_bounds = array<i64: 1, 32>}, {pipeline_mode = #tpu.pipeline_mode<synchronous>, transform_indices = @transform_21, window_bounds = array<i64: 1, 32>}, {pipeline_mode = #tpu.pipeline_mode<synchronous>, transform_indices = @transform_22, window_bounds = array<i64: 1, 32>}, {pipeline_mode = #tpu.pipeline_mode<synchronous>, transform_indices = @transform_23, window_bounds = array<i64: 1, 32>}, {pipeline_mode = #tpu.pipeline_mode<synchronous>, transform_indices = @transform_24, window_bounds = array<i64: 32, 5>}, {pipeline_mode = #tpu.pipeline_mode<synchronous>, transform_indices = @transform_25, window_bounds = array<i64: 1, 5>}, {transform_indices = @transform_26, window_bounds = array<i64: 8, 128>}, {transform_indices = @transform_27, window_bounds = array<i64: 8, 32>}]} {
    %c0 = arith.constant 0 : index
    %c0_0 = arith.constant 0 : index
    %0 = vector.load %arg1[%c0, %c0_0] : memref<8x12xf32, #tpu.memory_space<vmem>>, vector<8x12xf32>
    %c0_1 = arith.constant 0 : index
    %c0_2 = arith.constant 0 : index
    %1 = vector.load %arg5[%c0_1, %c0_2] : memref<12x32xf32, #tpu.memory_space<vmem>>, vector<12x32xf32>
    %cst = arith.constant dense<0.000000e+00> : vector<8x32xf32>
    %2 = tpu.matmul %0, %1, %cst {dimension_numbers = #tpu.dot_dimension_numbers<[1], [0], [0], [1], [0, 0, 1, 1], [], []>} : vector<8x12xf32>, vector<12x32xf32>, vector<8x32xf32> -> vector<8x32xf32>
    %c0_3 = arith.constant 0 : index
    %c0_4 = arith.constant 0 : index
    %3 = vector.load %arg6[%c0_3, %c0_4] : memref<1x32xf32, #tpu.memory_space<vmem>>, vector<1x32xf32>
    %4 = vector.broadcast %3 : vector<1x32xf32> to vector<8x32xf32>
    %5 = arith.addf %2, %4 : vector<8x32xf32>
    %cst_5 = arith.constant 0.000000e+00 : f32
    %6 = vector.broadcast %cst_5 : f32 to vector<8x32xf32>
    %7 = arith.maximumf %5, %6 : vector<8x32xf32>
    %c0_6 = arith.constant 0 : index
    %c0_7 = arith.constant 0 : index
    %8 = vector.load %arg7[%c0_6, %c0_7] : memref<1x32xf32, #tpu.memory_space<vmem>>, vector<1x32xf32>
    %c0_8 = arith.constant 0 : index
    %c0_9 = arith.constant 0 : index
    %9 = vector.load %arg8[%c0_8, %c0_9] : memref<1x32xf32, #tpu.memory_space<vmem>>, vector<1x32xf32>
    %cst_10 = arith.constant dense<0.000000e+00> : vector<8xf32>
    %10 = vector.multi_reduction <add>, %7, %cst_10 [1] : vector<8x32xf32> to vector<8xf32>
    %11 = vector.shape_cast %10 : vector<8xf32> to vector<8x1xf32>
    %cst_11 = arith.constant 3.200000e+01 : f32
    %12 = vector.broadcast %cst_11 : f32 to vector<8x1xf32>
    %13 = arith.divf %11, %12 : vector<8x1xf32>
    %14 = vector.broadcast %13 : vector<8x1xf32> to vector<8x32xf32>
    %15 = arith.subf %7, %14 : vector<8x32xf32>
    %16 = arith.mulf %15, %15 : vector<8x32xf32>
    %cst_12 = arith.constant dense<0.000000e+00> : vector<8xf32>
    %17 = vector.multi_reduction <add>, %16, %cst_12 [1] : vector<8x32xf32> to vector<8xf32>
    %18 = vector.shape_cast %17 : vector<8xf32> to vector<8x1xf32>
    %cst_13 = arith.constant 3.200000e+01 : f32
    %19 = vector.broadcast %cst_13 : f32 to vector<8x1xf32>
    %20 = arith.divf %18, %19 : vector<8x1xf32>
    %21 = vector.broadcast %13 : vector<8x1xf32> to vector<8x32xf32>
    %22 = arith.subf %7, %21 : vector<8x32xf32>
    %cst_14 = arith.constant 9.99999974E-6 : f32
    %23 = vector.broadcast %cst_14 : f32 to vector<8x1xf32>
    %24 = arith.addf %20, %23 : vector<8x1xf32>
    %25 = math.rsqrt %24 : vector<8x1xf32>
    %26 = vector.broadcast %25 : vector<8x1xf32> to vector<8x32xf32>
    %27 = arith.mulf %22, %26 : vector<8x32xf32>
    %28 = vector.broadcast %8 : vector<1x32xf32> to vector<8x32xf32>
    %29 = arith.mulf %27, %28 : vector<8x32xf32>
    %30 = vector.broadcast %9 : vector<1x32xf32> to vector<8x32xf32>
    %31 = arith.addf %29, %30 : vector<8x32xf32>
    %c0_15 = arith.constant 0 : index
    %c0_16 = arith.constant 0 : index
    %32 = vector.load %arg9[%c0_15, %c0_16] : memref<32x32xf32, #tpu.memory_space<vmem>>, vector<32x32xf32>
    %cst_17 = arith.constant dense<0.000000e+00> : vector<8x32xf32>
    %33 = tpu.matmul %31, %32, %cst_17 {dimension_numbers = #tpu.dot_dimension_numbers<[1], [0], [0], [1], [0, 0, 1, 1], [], []>} : vector<8x32xf32>, vector<32x32xf32>, vector<8x32xf32> -> vector<8x32xf32>
    %c0_18 = arith.constant 0 : index
    %c0_19 = arith.constant 0 : index
    %34 = vector.load %arg10[%c0_18, %c0_19] : memref<1x32xf32, #tpu.memory_space<vmem>>, vector<1x32xf32>
    %35 = vector.broadcast %34 : vector<1x32xf32> to vector<8x32xf32>
    %36 = arith.addf %33, %35 : vector<8x32xf32>
    %cst_20 = arith.constant 0.000000e+00 : f32
    %37 = vector.broadcast %cst_20 : f32 to vector<8x32xf32>
    %38 = arith.maximumf %36, %37 : vector<8x32xf32>
    %c0_21 = arith.constant 0 : index
    %c0_22 = arith.constant 0 : index
    %39 = vector.load %arg11[%c0_21, %c0_22] : memref<1x32xf32, #tpu.memory_space<vmem>>, vector<1x32xf32>
    %c0_23 = arith.constant 0 : index
    %c0_24 = arith.constant 0 : index
    %40 = vector.load %arg12[%c0_23, %c0_24] : memref<1x32xf32, #tpu.memory_space<vmem>>, vector<1x32xf32>
    %cst_25 = arith.constant dense<0.000000e+00> : vector<8xf32>
    %41 = vector.multi_reduction <add>, %38, %cst_25 [1] : vector<8x32xf32> to vector<8xf32>
    %42 = vector.shape_cast %41 : vector<8xf32> to vector<8x1xf32>
    %cst_26 = arith.constant 3.200000e+01 : f32
    %43 = vector.broadcast %cst_26 : f32 to vector<8x1xf32>
    %44 = arith.divf %42, %43 : vector<8x1xf32>
    %45 = vector.broadcast %44 : vector<8x1xf32> to vector<8x32xf32>
    %46 = arith.subf %38, %45 : vector<8x32xf32>
    %47 = arith.mulf %46, %46 : vector<8x32xf32>
    %cst_27 = arith.constant dense<0.000000e+00> : vector<8xf32>
    %48 = vector.multi_reduction <add>, %47, %cst_27 [1] : vector<8x32xf32> to vector<8xf32>
    %49 = vector.shape_cast %48 : vector<8xf32> to vector<8x1xf32>
    %cst_28 = arith.constant 3.200000e+01 : f32
    %50 = vector.broadcast %cst_28 : f32 to vector<8x1xf32>
    %51 = arith.divf %49, %50 : vector<8x1xf32>
    %52 = vector.broadcast %44 : vector<8x1xf32> to vector<8x32xf32>
    %53 = arith.subf %38, %52 : vector<8x32xf32>
    %cst_29 = arith.constant 9.99999974E-6 : f32
    %54 = vector.broadcast %cst_29 : f32 to vector<8x1xf32>
    %55 = arith.addf %51, %54 : vector<8x1xf32>
    %56 = math.rsqrt %55 : vector<8x1xf32>
    %57 = vector.broadcast %56 : vector<8x1xf32> to vector<8x32xf32>
    %58 = arith.mulf %53, %57 : vector<8x32xf32>
    %59 = vector.broadcast %39 : vector<1x32xf32> to vector<8x32xf32>
    %60 = arith.mulf %58, %59 : vector<8x32xf32>
    %61 = vector.broadcast %40 : vector<1x32xf32> to vector<8x32xf32>
    %62 = arith.addf %60, %61 : vector<8x32xf32>
    %c0_30 = arith.constant 0 : index
    %c0_31 = arith.constant 0 : index
    %63 = vector.load %arg2[%c0_30, %c0_31] : memref<8x32xf32, #tpu.memory_space<vmem>>, vector<8x32xf32>
    %c0_32 = arith.constant 0 : index
    %c0_33 = arith.constant 0 : index
    %64 = vector.load %arg3[%c0_32, %c0_33] : memref<8x1xf32, #tpu.memory_space<vmem>>, vector<8x1xf32>
    %65 = vector.broadcast %64 : vector<8x1xf32> to vector<8x32xf32>
    %66 = arith.mulf %63, %65 : vector<8x32xf32>
    %c0_34 = arith.constant 0 : index
    %c0_35 = arith.constant 0 : index
    %67 = vector.load %arg13[%c0_34, %c0_35] : memref<32x32xf32, #tpu.memory_space<vmem>>, vector<32x32xf32>
    %cst_36 = arith.constant dense<0.000000e+00> : vector<8x32xf32>
    %68 = tpu.matmul %62, %67, %cst_36 {dimension_numbers = #tpu.dot_dimension_numbers<[1], [0], [0], [1], [0, 0, 1, 1], [], []>} : vector<8x32xf32>, vector<32x32xf32>, vector<8x32xf32> -> vector<8x32xf32>
    %c0_37 = arith.constant 0 : index
    %c0_38 = arith.constant 0 : index
    %69 = vector.load %arg16[%c0_37, %c0_38] : memref<32x32xf32, #tpu.memory_space<vmem>>, vector<32x32xf32>
    %cst_39 = arith.constant dense<0.000000e+00> : vector<8x32xf32>
    %70 = tpu.matmul %66, %69, %cst_39 {dimension_numbers = #tpu.dot_dimension_numbers<[1], [0], [0], [1], [0, 0, 1, 1], [], []>} : vector<8x32xf32>, vector<32x32xf32>, vector<8x32xf32> -> vector<8x32xf32>
    %71 = arith.addf %68, %70 : vector<8x32xf32>
    %c0_40 = arith.constant 0 : index
    %c0_41 = arith.constant 0 : index
    %72 = vector.load %arg19[%c0_40, %c0_41] : memref<1x32xf32, #tpu.memory_space<vmem>>, vector<1x32xf32>
    %73 = vector.broadcast %72 : vector<1x32xf32> to vector<8x32xf32>
    %74 = arith.addf %71, %73 : vector<8x32xf32>
    %75 = arith.negf %74 : vector<8x32xf32>
    %76 = math.exp %75 : vector<8x32xf32>
    %cst_42 = arith.constant 1.000000e+00 : f32
    %77 = vector.broadcast %cst_42 : f32 to vector<8x32xf32>
    %78 = arith.addf %77, %76 : vector<8x32xf32>
    %79 = arith.divf %77, %78 : vector<8x32xf32>
    %c0_43 = arith.constant 0 : index
    %c0_44 = arith.constant 0 : index
    %80 = vector.load %arg14[%c0_43, %c0_44] : memref<32x32xf32, #tpu.memory_space<vmem>>, vector<32x32xf32>
    %cst_45 = arith.constant dense<0.000000e+00> : vector<8x32xf32>
    %81 = tpu.matmul %62, %80, %cst_45 {dimension_numbers = #tpu.dot_dimension_numbers<[1], [0], [0], [1], [0, 0, 1, 1], [], []>} : vector<8x32xf32>, vector<32x32xf32>, vector<8x32xf32> -> vector<8x32xf32>
    %c0_46 = arith.constant 0 : index
    %c0_47 = arith.constant 0 : index
    %82 = vector.load %arg17[%c0_46, %c0_47] : memref<32x32xf32, #tpu.memory_space<vmem>>, vector<32x32xf32>
    %cst_48 = arith.constant dense<0.000000e+00> : vector<8x32xf32>
    %83 = tpu.matmul %66, %82, %cst_48 {dimension_numbers = #tpu.dot_dimension_numbers<[1], [0], [0], [1], [0, 0, 1, 1], [], []>} : vector<8x32xf32>, vector<32x32xf32>, vector<8x32xf32> -> vector<8x32xf32>
    %84 = arith.addf %81, %83 : vector<8x32xf32>
    %c0_49 = arith.constant 0 : index
    %c0_50 = arith.constant 0 : index
    %85 = vector.load %arg20[%c0_49, %c0_50] : memref<1x32xf32, #tpu.memory_space<vmem>>, vector<1x32xf32>
    %86 = vector.broadcast %85 : vector<1x32xf32> to vector<8x32xf32>
    %87 = arith.addf %84, %86 : vector<8x32xf32>
    %88 = arith.negf %87 : vector<8x32xf32>
    %89 = math.exp %88 : vector<8x32xf32>
    %cst_51 = arith.constant 1.000000e+00 : f32
    %90 = vector.broadcast %cst_51 : f32 to vector<8x32xf32>
    %91 = arith.addf %90, %89 : vector<8x32xf32>
    %92 = arith.divf %90, %91 : vector<8x32xf32>
    %c0_52 = arith.constant 0 : index
    %c0_53 = arith.constant 0 : index
    %93 = vector.load %arg15[%c0_52, %c0_53] : memref<32x32xf32, #tpu.memory_space<vmem>>, vector<32x32xf32>
    %cst_54 = arith.constant dense<0.000000e+00> : vector<8x32xf32>
    %94 = tpu.matmul %62, %93, %cst_54 {dimension_numbers = #tpu.dot_dimension_numbers<[1], [0], [0], [1], [0, 0, 1, 1], [], []>} : vector<8x32xf32>, vector<32x32xf32>, vector<8x32xf32> -> vector<8x32xf32>
    %c0_55 = arith.constant 0 : index
    %c0_56 = arith.constant 0 : index
    %95 = vector.load %arg21[%c0_55, %c0_56] : memref<1x32xf32, #tpu.memory_space<vmem>>, vector<1x32xf32>
    %96 = vector.broadcast %95 : vector<1x32xf32> to vector<8x32xf32>
    %97 = arith.addf %94, %96 : vector<8x32xf32>
    %c0_57 = arith.constant 0 : index
    %c0_58 = arith.constant 0 : index
    %98 = vector.load %arg18[%c0_57, %c0_58] : memref<32x32xf32, #tpu.memory_space<vmem>>, vector<32x32xf32>
    %cst_59 = arith.constant dense<0.000000e+00> : vector<8x32xf32>
    %99 = tpu.matmul %66, %98, %cst_59 {dimension_numbers = #tpu.dot_dimension_numbers<[1], [0], [0], [1], [0, 0, 1, 1], [], []>} : vector<8x32xf32>, vector<32x32xf32>, vector<8x32xf32> -> vector<8x32xf32>
    %c0_60 = arith.constant 0 : index
    %c0_61 = arith.constant 0 : index
    %100 = vector.load %arg22[%c0_60, %c0_61] : memref<1x32xf32, #tpu.memory_space<vmem>>, vector<1x32xf32>
    %101 = vector.broadcast %100 : vector<1x32xf32> to vector<8x32xf32>
    %102 = arith.addf %99, %101 : vector<8x32xf32>
    %103 = arith.mulf %79, %102 : vector<8x32xf32>
    %104 = arith.addf %97, %103 : vector<8x32xf32>
    %105 = math.tanh %104 : vector<8x32xf32>
    %cst_62 = arith.constant 1.000000e+00 : f32
    %106 = vector.broadcast %cst_62 : f32 to vector<8x32xf32>
    %107 = arith.subf %106, %92 : vector<8x32xf32>
    %108 = arith.mulf %107, %105 : vector<8x32xf32>
    %109 = arith.mulf %92, %66 : vector<8x32xf32>
    %110 = arith.addf %108, %109 : vector<8x32xf32>
    %c0_63 = arith.constant 0 : index
    %c0_64 = arith.constant 0 : index
    %111 = vector.load %arg28[%c0_63, %c0_64] : memref<8x32xf32, #tpu.memory_space<vmem>>, vector<8x32xf32>
    tpu.vector_store %arg28[%c0_63, %c0_64], %110 {strides = array<i32>} : memref<8x32xf32, #tpu.memory_space<vmem>>, vector<8x32xf32>,
    %c0_65 = arith.constant 0 : index
    %c0_66 = arith.constant 0 : index
    %112 = vector.load %arg23[%c0_65, %c0_66] : memref<1x32xf32, #tpu.memory_space<vmem>>, vector<1x32xf32>
    %c0_67 = arith.constant 0 : index
    %c0_68 = arith.constant 0 : index
    %113 = vector.load %arg24[%c0_67, %c0_68] : memref<1x32xf32, #tpu.memory_space<vmem>>, vector<1x32xf32>
    %cst_69 = arith.constant dense<0.000000e+00> : vector<8xf32>
    %114 = vector.multi_reduction <add>, %110, %cst_69 [1] : vector<8x32xf32> to vector<8xf32>
    %115 = vector.shape_cast %114 : vector<8xf32> to vector<8x1xf32>
    %cst_70 = arith.constant 3.200000e+01 : f32
    %116 = vector.broadcast %cst_70 : f32 to vector<8x1xf32>
    %117 = arith.divf %115, %116 : vector<8x1xf32>
    %118 = vector.broadcast %117 : vector<8x1xf32> to vector<8x32xf32>
    %119 = arith.subf %110, %118 : vector<8x32xf32>
    %120 = arith.mulf %119, %119 : vector<8x32xf32>
    %cst_71 = arith.constant dense<0.000000e+00> : vector<8xf32>
    %121 = vector.multi_reduction <add>, %120, %cst_71 [1] : vector<8x32xf32> to vector<8xf32>
    %122 = vector.shape_cast %121 : vector<8xf32> to vector<8x1xf32>
    %cst_72 = arith.constant 3.200000e+01 : f32
    %123 = vector.broadcast %cst_72 : f32 to vector<8x1xf32>
    %124 = arith.divf %122, %123 : vector<8x1xf32>
    %125 = vector.broadcast %117 : vector<8x1xf32> to vector<8x32xf32>
    %126 = arith.subf %110, %125 : vector<8x32xf32>
    %cst_73 = arith.constant 9.99999974E-6 : f32
    %127 = vector.broadcast %cst_73 : f32 to vector<8x1xf32>
    %128 = arith.addf %124, %127 : vector<8x1xf32>
    %129 = math.rsqrt %128 : vector<8x1xf32>
    %130 = vector.broadcast %129 : vector<8x1xf32> to vector<8x32xf32>
    %131 = arith.mulf %126, %130 : vector<8x32xf32>
    %132 = vector.broadcast %112 : vector<1x32xf32> to vector<8x32xf32>
    %133 = arith.mulf %131, %132 : vector<8x32xf32>
    %134 = vector.broadcast %113 : vector<1x32xf32> to vector<8x32xf32>
    %135 = arith.addf %133, %134 : vector<8x32xf32>
    %c0_74 = arith.constant 0 : index
    %c0_75 = arith.constant 0 : index
    %136 = vector.load %arg25[%c0_74, %c0_75] : memref<32x5xf32, #tpu.memory_space<vmem>>, vector<32x5xf32>
    %cst_76 = arith.constant dense<0.000000e+00> : vector<8x5xf32>
    %137 = tpu.matmul %135, %136, %cst_76 {dimension_numbers = #tpu.dot_dimension_numbers<[1], [0], [0], [1], [0, 0, 1, 1], [], []>} : vector<8x32xf32>, vector<32x5xf32>, vector<8x5xf32> -> vector<8x5xf32>
    %c0_77 = arith.constant 0 : index
    %c0_78 = arith.constant 0 : index
    %138 = vector.load %arg26[%c0_77, %c0_78] : memref<1x5xf32, #tpu.memory_space<vmem>>, vector<1x5xf32>
    %139 = vector.broadcast %138 : vector<1x5xf32> to vector<8x5xf32>
    %140 = arith.addf %137, %139 : vector<8x5xf32>
    %c0_79 = arith.constant 0 : index
    %c0_80 = arith.constant 0 : index
    %141 = vector.load %arg4[%c0_79, %c0_80] : memref<8x5xf32, #tpu.memory_space<vmem>>, vector<8x5xf32>
    %cst_81 = arith.constant 5.000000e-01 : f32
    %142 = vector.broadcast %cst_81 : f32 to vector<8x5xf32>
    %143 = arith.cmpf ogt, %141, %142 : vector<8x5xf32>
    %cst_82 = arith.constant -1.000000e+10 : f32
    %144 = vector.broadcast %cst_82 : f32 to vector<8x5xf32>
    %145 = arith.select %143, %140, %144 : vector<8x5xi1>, vector<8x5xf32>
    %cst_83 = arith.constant dense<0xFF800000> : vector<8xf32>
    %146 = vector.multi_reduction <maximumf>, %145, %cst_83 [1] : vector<8x5xf32> to vector<8xf32>
    %147 = vector.shape_cast %146 : vector<8xf32> to vector<8x1xf32>
    %148 = vector.broadcast %147 : vector<8x1xf32> to vector<8x5xf32>
    %149 = arith.subf %145, %148 : vector<8x5xf32>
    %150 = math.exp %149 : vector<8x5xf32>
    %cst_84 = arith.constant dense<0.000000e+00> : vector<8xf32>
    %151 = vector.multi_reduction <add>, %150, %cst_84 [1] : vector<8x5xf32> to vector<8xf32>
    %152 = vector.shape_cast %151 : vector<8xf32> to vector<8x1xf32>
    %153 = math.log %152 : vector<8x1xf32>
    %154 = arith.addf %147, %153 : vector<8x1xf32>
    %155 = vector.broadcast %154 : vector<8x1xf32> to vector<8x5xf32>
    %156 = arith.subf %145, %155 : vector<8x5xf32>
    %157 = tpu.iota {dimensions = array<i32: 1>} : vector<8x5xi32>
    %158 = vector.broadcast %147 : vector<8x1xf32> to vector<8x5xf32>
    %159 = arith.cmpf oge, %145, %158 : vector<8x5xf32>
    %c5_i32 = arith.constant 5 : i32
    %160 = vector.broadcast %c5_i32 : i32 to vector<8x5xi32>
    %161 = arith.select %159, %157, %160 : vector<8x5xi1>, vector<8x5xi32>
    %cst_85 = arith.constant dense<2147483647> : vector<8xi32>
    %162 = vector.multi_reduction <minsi>, %161, %cst_85 [1] : vector<8x5xi32> to vector<8xi32>
    %163 = vector.shape_cast %162 : vector<8xi32> to vector<8x1xi32>
    %164 = vector.broadcast %163 : vector<8x1xi32> to vector<8x5xi32>
    %165 = arith.cmpi eq, %157, %164 : vector<8x5xi32>
    %cst_86 = arith.constant 0.000000e+00 : f32
    %166 = vector.broadcast %cst_86 : f32 to vector<8x5xf32>
    %167 = arith.select %165, %156, %166 : vector<8x5xi1>, vector<8x5xf32>
    %cst_87 = arith.constant dense<0.000000e+00> : vector<8xf32>
    %168 = vector.multi_reduction <add>, %167, %cst_87 [1] : vector<8x5xf32> to vector<8xf32>
    %169 = vector.shape_cast %168 : vector<8xf32> to vector<8x1xf32>
    %170 = tpu.iota {dimensions = array<i32: 1>} : vector<8x128xi32>
    %c0_i32 = arith.constant 0 : i32
    %171 = vector.broadcast %c0_i32 : i32 to vector<8x128xi32>
    %172 = arith.cmpi eq, %170, %171 : vector<8x128xi32>
    %173 = arith.sitofp %163 : vector<8x1xi32> to vector<8x1xf32>
    %c1_i32 = arith.constant 1 : i32
    %174 = vector.broadcast %c1_i32 : i32 to vector<8x128xi32>
    %175 = arith.cmpi eq, %170, %174 : vector<8x128xi32>
    %cst_88 = arith.constant 0.000000e+00 : f32
    %176 = vector.shape_cast %169 : vector<8x1xf32> to vector<8x1xf32>
    %177 = vector.broadcast %176 : vector<8x1xf32> to vector<8x128xf32>
    %178 = vector.broadcast %cst_88 : f32 to vector<8x128xf32>
    %179 = arith.select %175, %177, %178 : vector<8x128xi1>, vector<8x128xf32>
    %180 = vector.shape_cast %173 : vector<8x1xf32> to vector<8x1xf32>
    %181 = vector.broadcast %180 : vector<8x1xf32> to vector<8x128xf32>
    %182 = arith.select %172, %181, %179 : vector<8x128xi1>, vector<8x128xf32>
    %c0_89 = arith.constant 0 : index
    %c0_90 = arith.constant 0 : index
    %183 = vector.load %arg27[%c0_89, %c0_90] : memref<8x128xf32, #tpu.memory_space<vmem>>, vector<8x128xf32>
    tpu.vector_store %arg27[%c0_89, %c0_90], %182 {strides = array<i32>} : memref<8x128xf32, #tpu.memory_space<vmem>>, vector<8x128xf32>,
    return
  }
  func.func @transform_0(%arg0: i32) -> (i32, i32) {
    %c0_i32 = arith.constant 0 : i32
    %c0_i32_0 = arith.constant 0 : i32
    return %arg0, %c0_i32 : i32, i32
  }
  func.func @transform_1(%arg0: i32) -> (i32, i32) {
    %c0_i32 = arith.constant 0 : i32
    %c0_i32_0 = arith.constant 0 : i32
    return %arg0, %c0_i32 : i32, i32
  }
  func.func @transform_2(%arg0: i32) -> (i32, i32) {
    %c0_i32 = arith.constant 0 : i32
    %c0_i32_0 = arith.constant 0 : i32
    return %arg0, %c0_i32 : i32, i32
  }
  func.func @transform_3(%arg0: i32) -> (i32, i32) {
    %c0_i32 = arith.constant 0 : i32
    %c0_i32_0 = arith.constant 0 : i32
    return %arg0, %c0_i32 : i32, i32
  }
  func.func @transform_4(%arg0: i32) -> (i32, i32) {
    %c0_i32 = arith.constant 0 : i32
    %c0_i32_0 = arith.constant 0 : i32
    %c0_i32_1 = arith.constant 0 : i32
    return %c0_i32, %c0_i32_0 : i32, i32
  }
  func.func @transform_5(%arg0: i32) -> (i32, i32) {
    %c0_i32 = arith.constant 0 : i32
    %c0_i32_0 = arith.constant 0 : i32
    %c0_i32_1 = arith.constant 0 : i32
    return %c0_i32, %c0_i32_0 : i32, i32
  }
  func.func @transform_6(%arg0: i32) -> (i32, i32) {
    %c0_i32 = arith.constant 0 : i32
    %c0_i32_0 = arith.constant 0 : i32
    %c0_i32_1 = arith.constant 0 : i32
    return %c0_i32, %c0_i32_0 : i32, i32
  }
  func.func @transform_7(%arg0: i32) -> (i32, i32) {
    %c0_i32 = arith.constant 0 : i32
    %c0_i32_0 = arith.constant 0 : i32
    %c0_i32_1 = arith.constant 0 : i32
    return %c0_i32, %c0_i32_0 : i32, i32
  }
  func.func @transform_8(%arg0: i32) -> (i32, i32) {
    %c0_i32 = arith.constant 0 : i32
    %c0_i32_0 = arith.constant 0 : i32
    %c0_i32_1 = arith.constant 0 : i32
    return %c0_i32, %c0_i32_0 : i32, i32
  }
  func.func @transform_9(%arg0: i32) -> (i32, i32) {
    %c0_i32 = arith.constant 0 : i32
    %c0_i32_0 = arith.constant 0 : i32
    %c0_i32_1 = arith.constant 0 : i32
    return %c0_i32, %c0_i32_0 : i32, i32
  }
  func.func @transform_10(%arg0: i32) -> (i32, i32) {
    %c0_i32 = arith.constant 0 : i32
    %c0_i32_0 = arith.constant 0 : i32
    %c0_i32_1 = arith.constant 0 : i32
    return %c0_i32, %c0_i32_0 : i32, i32
  }
  func.func @transform_11(%arg0: i32) -> (i32, i32) {
    %c0_i32 = arith.constant 0 : i32
    %c0_i32_0 = arith.constant 0 : i32
    %c0_i32_1 = arith.constant 0 : i32
    return %c0_i32, %c0_i32_0 : i32, i32
  }
  func.func @transform_12(%arg0: i32) -> (i32, i32) {
    %c0_i32 = arith.constant 0 : i32
    %c0_i32_0 = arith.constant 0 : i32
    %c0_i32_1 = arith.constant 0 : i32
    return %c0_i32, %c0_i32_0 : i32, i32
  }
  func.func @transform_13(%arg0: i32) -> (i32, i32) {
    %c0_i32 = arith.constant 0 : i32
    %c0_i32_0 = arith.constant 0 : i32
    %c0_i32_1 = arith.constant 0 : i32
    return %c0_i32, %c0_i32_0 : i32, i32
  }
  func.func @transform_14(%arg0: i32) -> (i32, i32) {
    %c0_i32 = arith.constant 0 : i32
    %c0_i32_0 = arith.constant 0 : i32
    %c0_i32_1 = arith.constant 0 : i32
    return %c0_i32, %c0_i32_0 : i32, i32
  }
  func.func @transform_15(%arg0: i32) -> (i32, i32) {
    %c0_i32 = arith.constant 0 : i32
    %c0_i32_0 = arith.constant 0 : i32
    %c0_i32_1 = arith.constant 0 : i32
    return %c0_i32, %c0_i32_0 : i32, i32
  }
  func.func @transform_16(%arg0: i32) -> (i32, i32) {
    %c0_i32 = arith.constant 0 : i32
    %c0_i32_0 = arith.constant 0 : i32
    %c0_i32_1 = arith.constant 0 : i32
    return %c0_i32, %c0_i32_0 : i32, i32
  }
  func.func @transform_17(%arg0: i32) -> (i32, i32) {
    %c0_i32 = arith.constant 0 : i32
    %c0_i32_0 = arith.constant 0 : i32
    %c0_i32_1 = arith.constant 0 : i32
    return %c0_i32, %c0_i32_0 : i32, i32
  }
  func.func @transform_18(%arg0: i32) -> (i32, i32) {
    %c0_i32 = arith.constant 0 : i32
    %c0_i32_0 = arith.constant 0 : i32
    %c0_i32_1 = arith.constant 0 : i32
    return %c0_i32, %c0_i32_0 : i32, i32
  }
  func.func @transform_19(%arg0: i32) -> (i32, i32) {
    %c0_i32 = arith.constant 0 : i32
    %c0_i32_0 = arith.constant 0 : i32
    %c0_i32_1 = arith.constant 0 : i32
    return %c0_i32, %c0_i32_0 : i32, i32
  }
  func.func @transform_20(%arg0: i32) -> (i32, i32) {
    %c0_i32 = arith.constant 0 : i32
    %c0_i32_0 = arith.constant 0 : i32
    %c0_i32_1 = arith.constant 0 : i32
    return %c0_i32, %c0_i32_0 : i32, i32
  }
  func.func @transform_21(%arg0: i32) -> (i32, i32) {
    %c0_i32 = arith.constant 0 : i32
    %c0_i32_0 = arith.constant 0 : i32
    %c0_i32_1 = arith.constant 0 : i32
    return %c0_i32, %c0_i32_0 : i32, i32
  }
  func.func @transform_22(%arg0: i32) -> (i32, i32) {
    %c0_i32 = arith.constant 0 : i32
    %c0_i32_0 = arith.constant 0 : i32
    %c0_i32_1 = arith.constant 0 : i32
    return %c0_i32, %c0_i32_0 : i32, i32
  }
  func.func @transform_23(%arg0: i32) -> (i32, i32) {
    %c0_i32 = arith.constant 0 : i32
    %c0_i32_0 = arith.constant 0 : i32
    %c0_i32_1 = arith.constant 0 : i32
    return %c0_i32, %c0_i32_0 : i32, i32
  }
  func.func @transform_24(%arg0: i32) -> (i32, i32) {
    %c0_i32 = arith.constant 0 : i32
    %c0_i32_0 = arith.constant 0 : i32
    %c0_i32_1 = arith.constant 0 : i32
    return %c0_i32, %c0_i32_0 : i32, i32
  }
  func.func @transform_25(%arg0: i32) -> (i32, i32) {
    %c0_i32 = arith.constant 0 : i32
    %c0_i32_0 = arith.constant 0 : i32
    %c0_i32_1 = arith.constant 0 : i32
    return %c0_i32, %c0_i32_0 : i32, i32
  }
  func.func @transform_26(%arg0: i32) -> (i32, i32) {
    %c0_i32 = arith.constant 0 : i32
    %c0_i32_0 = arith.constant 0 : i32
    return %arg0, %c0_i32 : i32, i32
  }
  func.func @transform_27(%arg0: i32) -> (i32, i32) {
    %c0_i32 = arith.constant 0 : i32
    %c0_i32_0 = arith.constant 0 : i32
    return %arg0, %c0_i32 : i32, i32
  }
}

</mosaic_0001>

<bundles_post_ra>
// kernel: tpu_custom_call.1
= control target key start
LH: loop header
LB: loop body
LE: loop exit
PB: predicated region body
PF: predicated region fallthrough
CT: control target
= control target key end

     0   :  { %s2303_s0 = inlined_call_operand.hbm [shape: f32[8,12], index: 0, kind: input, shape index: {}]   ;;  %s2304_s1 = inlined_call_operand.hbm [shape: f32[8,32], index: 1, kind: input, shape index: {}]   ;;  %s2305_s2 = inlined_call_operand.vmem [shape: f32[8,1], index: 2, kind: input, shape index: {}]   ;;  %s2306_s3 = inlined_call_operand.hbm [shape: f32[8,5], index: 3, kind: input, shape index: {}]   ;;  %s2307_s4 = inlined_call_operand.hbm [shape: f32[12,32], index: 4, kind: input, shape index: {}]   ;;  %s2308_s5 = inlined_call_operand.vmem [shape: f32[1,32], index: 5, kind: input, shape index: {}]   ;;  %s2309_s6 = inlined_call_operand.hbm [shape: f32[1,32], index: 6, kind: input, shape index: {}]   ;;  %s2310_s7 = inlined_call_operand.hbm [shape: f32[1,32], index: 7, kind: input, shape index: {}]   ;;  %s2311_s8 = inlined_call_operand.vmem [shape: f32[32,32], index: 8, kind: input, shape index: {}]   ;;  %s2312_s9 = inlined_call_operand.hbm [shape: f32[1,32], index: 9, kind: input, shape index: {}]   ;;  %s2313_s10 = inlined_call_operand.hbm [shape: f32[1,32], index: 10, kind: input, shape index: {}]   ;;  %s2314_s11 = inlined_call_operand.hbm [shape: f32[1,32], index: 11, kind: input, shape index: {}]   ;;  %s2315_s12 = inlined_call_operand.vmem [shape: f32[32,32], index: 12, kind: input, shape index: {}]   ;;  %s2316_s13 = inlined_call_operand.vmem [shape: f32[32,32], index: 13, kind: input, shape index: {}]   ;;  %s2317_s14 = inlined_call_operand.hbm [shape: f32[32,32], index: 14, kind: input, shape index: {}]   ;;  %s2318_s15 = inlined_call_operand.hbm [shape: f32[32,32], index: 15, kind: input, shape index: {}]   ;;  %s2319_s16 = inlined_call_operand.hbm [shape: f32[32,32], index: 16, kind: input, shape index: {}]   ;;  %s2320_s17 = inlined_call_operand.hbm [shape: f32[32,32], index: 17, kind: input, shape index: {}]   ;;  %s2321_s18 = inlined_call_operand.vmem [shape: f32[1,32], index: 18, kind: input, shape index: {}]   ;;  %s2322_s19 = inlined_call_operand.vmem [shape: f32[1,32], index: 19, kind: input, shape index: {}]   ;;  %s2323_s20 = inlined_call_operand.vmem [shape: f32[1,32], index: 20, kind: input, shape index: {}]   ;;  %s2324_s21 = inlined_call_operand.vmem [shape: f32[1,32], index: 21, kind: input, shape index: {}]   ;;  %s2325_s22 = inlined_call_operand.vmem [shape: f32[1,32], index: 22, kind: input, shape index: {}]   ;;  %s2326_s23 = inlined_call_operand.vmem [shape: f32[1,32], index: 23, kind: input, shape index: {}]   ;;  %s2327_s24 = inlined_call_operand.vmem [shape: f32[32,5], index: 24, kind: input, shape index: {}]   ;;  %s2328_s25 = inlined_call_operand.vmem [shape: f32[1,5], index: 25, kind: input, shape index: {}]   ;;  %s2329_s26 = inlined_call_operand.hbm [shape: f32[8,128], index: 26, kind: output, shape index: {0}]   ;;  %s2330_s27 = inlined_call_operand.hbm [shape: f32[8,32], index: 27, kind: output, shape index: {1}]  }
   0x1   :  { %2343 = sst [smem:[#allocation35_spill]] %s2303_s0 }
   0x2   :  { %2344 = sst [smem:[#allocation36_spill]] %s2304_s1 }
   0x3   :  { %2345 = sst [smem:[#allocation37_spill]] %s2305_s2 }
   0x4   :  { %2346 = sst [smem:[#allocation38_spill]] %s2306_s3 }
   0x5   :  { %2347 = sst [smem:[#allocation39_spill]] %s2307_s4 }
   0x6   :  { %2348 = sst [smem:[#allocation40_spill]] %s2308_s5 }
   0x7   :  { %2349 = sst [smem:[#allocation41_spill]] %s2309_s6 }
   0x8   :  { %2350 = sst [smem:[#allocation42_spill]] %s2310_s7 }
   0x9   :  { %2351 = sst [smem:[#allocation43_spill]] %s2311_s8 }
   0xa   :  { %2352 = sst [smem:[#allocation44_spill]] %s2312_s9 }
   0xb   :  { %2353 = sst [smem:[#allocation45_spill]] %s2313_s10 }
   0xc   :  { %2354 = sst [smem:[#allocation46_spill]] %s2314_s11 }
   0xd   :  { %2355 = sst [smem:[#allocation47_spill]] %s2328_s25 }
   0xe   :  { %2356 = sst [smem:[#allocation48_spill]] %s2329_s26 }
   0xf   :  { %2357 = sst [smem:[#allocation49_spill]] %s2330_s27 }
  0x10   :  { %33 = vsyncpa [#allocation3], 0 }
  0x11   :  { %34 = vsyncpa [#allocation6], 0 }
  0x12   :  { %35 = vsyncpa [#allocation9], 0 }
  0x13   :  { %36 = vsyncpa [#allocation12], 0 }
  0x14   :  { %37 = vsyncpa [#allocation15], 0 }
  0x15   :  { %38 = vsyncpa [#allocation18], 0 }
  0x16   :  { %39 = vsyncpa [#allocation21], 0 }
  0x17   :  { %40 = vsyncpa [#allocation4], 0 }
  0x18   :  { %41 = vsyncpa [#allocation25], 0  ;;  %s1790_s7 = smov [#allocation5]   ;;  %s1791_s8 = smov [#allocation8]  }
  0x19   :  { %s58_s4 = sshll.u32 %s1790_s7, 4  ;;  %s79_s30 = sshll.u32 %s1791_s8, 4  ;;  %s59_s4 = int_to_ptr.vmem [resolvable:$true] %s58_s4  ;;  %s1952_s30 = int_to_ptr.vmem [resolvable:$true] %s79_s30 }
  0x1a   :  { %s2358_s28 = sld [smem:[#allocation36_spill]] }
  0x20   :  { %s1442_s0 = scalar_lea.hbm %s2358_s28, 128 }
  0x21   :  { %p1443_p0 = scmp.ne.s32.totalorder %s2358_s28, %s1442_s0  ;;  %p1446_p1 = scmp.lt.u32.totalorder %s1442_s0, %s2358_s28 }
  0x23   :  { %p1448_p2 = pnand %p1446_p1, %p1443_p0 }
  0x25   :  { %1451 = shalt.err (!%p1448_p2)
}
  0x26   :  { %s1452_s11 = scalar_lea.vmem %s59_s4, 128  ;;  %p1457_p4 = scmp.lt.s32.totalorder %s59_s4, %s59_s4 }
  0x27   :  { %p1453_p3 = scmp.ne.s32.totalorder %s59_s4, %s1452_s11  ;;  %p1458_p5 = scmp.lt.s32.totalorder %s1452_s11, %s1452_s11 }
  0x29   :  { %p1459_p6 = por %p1458_p5, %p1457_p4 }
  0x2b   :  { %p1460_p7 = pnand %p1459_p6, %p1453_p3 }
  0x2d   :  { %1463 = shalt.err (!%p1460_p7)
}
  0x2e   :  { %61 = dma.hbm_to_vmem [thread:$0]  %s2358_s28, 128, %s59_s4, [#allocation6]  }
  0x2f   :  { %s2359_s9 = sld [smem:[#allocation39_spill]] }
  0x35   :  { %s1464_s5 = scalar_lea.hbm %s2359_s9, 256 }
  0x36   :  { %p1465_p8 = scmp.ne.s32.totalorder %s2359_s9, %s1464_s5  ;;  %p1468_p9 = scmp.lt.u32.totalorder %s1464_s5, %s2359_s9 }
  0x38   :  { %p1470_p10 = pnand %p1468_p9, %p1465_p8 }
  0x3a   :  { %1473 = shalt.err (!%p1470_p10)
}
  0x3b   :  { %s1474_s6 = scalar_lea.vmem %s1952_s30, 256  ;;  %p1479_p12 = scmp.lt.s32.totalorder %s1952_s30, %s1952_s30 }
  0x3c   :  { %p1475_p11 = scmp.ne.s32.totalorder %s1952_s30, %s1474_s6  ;;  %p1480_p13 = scmp.lt.s32.totalorder %s1474_s6, %s1474_s6 }
  0x3e   :  { %p1481_p0 = por %p1480_p13, %p1479_p12 }
  0x40   :  { %p1482_p1 = pnand %p1481_p0, %p1475_p11 }
  0x42   :  { %1485 = shalt.err (!%p1482_p1)
}
  0x43   :  { %s1792_s4 = smov 128   ;;  %s1793_s28 = smov 8  }
  0x44   :  { %85 = dma.hbm_to_vmem [thread:$0]  %s2359_s9, 256, %s1952_s30, [#allocation9], %s1792_s4, %s1792_s4, %s1793_s28  }
  0x45   :  { %s1794_s3 = smov [#allocation11]   ;;  %s1795_s8 = smov [#allocation14]  }
  0x46   :  { %s104_s7 = sshll.u32 %s1794_s3, 4  ;;  %s126_s5 = sshll.u32 %s1795_s8, 4  ;;  %s105_s7 = int_to_ptr.vmem [resolvable:$true] %s104_s7  ;;  %s127_s5 = int_to_ptr.vmem [resolvable:$true] %s126_s5 }
  0x47   :  { %s2360_s0 = sld [smem:[#allocation42_spill]] }
  0x4d   :  { %s1486_s1 = scalar_lea.hbm %s2360_s0, 16 }
  0x4e   :  { %p1487_p2 = scmp.ne.s32.totalorder %s2360_s0, %s1486_s1  ;;  %p1490_p3 = scmp.lt.u32.totalorder %s1486_s1, %s2360_s0 }
  0x50   :  { %p1492_p4 = pnand %p1490_p3, %p1487_p2 }
  0x52   :  { %1495 = shalt.err (!%p1492_p4)
}
  0x53   :  { %s1496_s30 = scalar_lea.vmem %s105_s7, 16  ;;  %s1500_s9 = scalar_lea.vmem %s105_s7, 32 }
  0x54   :  { %p1497_p5 = scmp.ne.s32.totalorder %s105_s7, %s1496_s30  ;;  %p1501_p6 = scmp.lt.s32.totalorder %s105_s7, %s105_s7 }
  0x55   :  { %p1502_p7 = scmp.lt.s32.totalorder %s1500_s9, %s1496_s30 }
  0x57   :  { %p1503_p8 = por %p1502_p7, %p1501_p6 }
  0x59   :  { %p1504_p9 = pnand %p1503_p8, %p1497_p5 }
  0x5b   :  { %1507 = shalt.err (!%p1504_p9)
}
  0x5c   :  { %107 = dma.hbm_to_vmem [thread:$0]  %s2360_s0, 16, %s105_s7, [#allocation12]  }
  0x5d   :  { %s2361_s8 = sld [smem:[#allocation45_spill]] }
  0x63   :  { %s1508_s10 = scalar_lea.hbm %s2361_s8, 16 }
  0x64   :  { %p1509_p10 = scmp.ne.s32.totalorder %s2361_s8, %s1508_s10  ;;  %p1512_p11 = scmp.lt.u32.totalorder %s1508_s10, %s2361_s8 }
  0x66   :  { %p1514_p12 = pnand %p1512_p11, %p1509_p10 }
  0x68   :  { %1517 = shalt.err (!%p1514_p12)
}
  0x69   :  { %s1518_s6 = scalar_lea.vmem %s127_s5, 16  ;;  %s1522_s30 = scalar_lea.vmem %s127_s5, 32 }
  0x6a   :  { %p1519_p13 = scmp.ne.s32.totalorder %s127_s5, %s1518_s6  ;;  %p1523_p0 = scmp.lt.s32.totalorder %s127_s5, %s127_s5 }
  0x6b   :  { %p1524_p1 = scmp.lt.s32.totalorder %s1522_s30, %s1518_s6 }
  0x6d   :  { %p1525_p2 = por %p1524_p1, %p1523_p0 }
  0x6f   :  { %p1526_p3 = pnand %p1525_p2, %p1519_p13 }
  0x71   :  { %1529 = shalt.err (!%p1526_p3)
}
  0x72   :  { %129 = dma.hbm_to_vmem [thread:$0]  %s2361_s8, 16, %s127_s5, [#allocation15]  }
  0x73   :  { %s1796_s9 = smov [#allocation17]   ;;  %s1797_s2 = smov [#allocation20]  }
  0x74   :  { %s149_s11 = sshll.u32 %s1796_s9, 4  ;;  %s173_s26 = sshll.u32 %s1797_s2, 4  ;;  %s150_s11 = int_to_ptr.vmem [resolvable:$true] %s149_s11  ;;  %s2010_s26 = int_to_ptr.vmem [resolvable:$true] %s173_s26 }
  0x75   :  { %s1530_s25 = scalar_lea.hbm %s2317_s14, 512 }
  0x76   :  { %p1531_p4 = scmp.ne.s32.totalorder %s2317_s14, %s1530_s25  ;;  %p1534_p5 = scmp.lt.u32.totalorder %s1530_s25, %s2317_s14 }
  0x78   :  { %p1536_p6 = pnand %p1534_p5, %p1531_p4 }
  0x7a   :  { %1539 = shalt.err (!%p1536_p6)
}
  0x7b   :  { %s1540_s5 = scalar_lea.vmem %s150_s11, 512  ;;  %p1545_p8 = scmp.lt.s32.totalorder %s150_s11, %s150_s11 }
  0x7c   :  { %p1541_p7 = scmp.ne.s32.totalorder %s150_s11, %s1540_s5  ;;  %p1546_p9 = scmp.lt.s32.totalorder %s1540_s5, %s1540_s5 }
  0x7e   :  { %p1547_p10 = por %p1546_p9, %p1545_p8 }
  0x80   :  { %p1548_p11 = pnand %p1547_p10, %p1541_p7 }
  0x82   :  { %1551 = shalt.err (!%p1548_p11)
}
  0x83   :  { %155 = dma.hbm_to_vmem [thread:$0]  %s2317_s14, 512, %s150_s11, [#allocation18], %s1792_s4, %s1792_s4, %s1793_s28  }
  0x84   :  { %s1552_s9 = scalar_lea.hbm %s2319_s16, 512 }
  0x85   :  { %p1553_p12 = scmp.ne.s32.totalorder %s2319_s16, %s1552_s9  ;;  %p1556_p13 = scmp.lt.u32.totalorder %s1552_s9, %s2319_s16 }
  0x87   :  { %p1558_p0 = pnand %p1556_p13, %p1553_p12 }
  0x89   :  { %1561 = shalt.err (!%p1558_p0)
}
  0x8a   :  { %s1562_s27 = scalar_lea.vmem %s2010_s26, 512  ;;  %p1567_p2 = scmp.lt.s32.totalorder %s2010_s26, %s2010_s26 }
  0x8b   :  { %p1563_p1 = scmp.ne.s32.totalorder %s2010_s26, %s1562_s27  ;;  %p1568_p3 = scmp.lt.s32.totalorder %s1562_s27, %s1562_s27 }
  0x8d   :  { %p1569_p4 = por %p1568_p3, %p1567_p2 }
  0x8f   :  { %p1570_p5 = pnand %p1569_p4, %p1563_p1 }
  0x91   :  { %1573 = shalt.err (!%p1570_p5)
}
  0x92   :  { %179 = dma.hbm_to_vmem [thread:$0]  %s2319_s16, 512, %s2010_s26, [#allocation21], %s1792_s4, %s1792_s4, %s1793_s28  }
  0x93   :  { %s1798_s29 = smov [#allocation2]   ;;  %s1799_s6 = smov [#allocation7]  }
  0x94   :  { %s48_s1 = sshll.u32 %s1798_s29, 4  ;;  %s70_s5 = sshll.u32 %s1799_s6, 4  ;;  %s49_s1 = int_to_ptr.vmem [resolvable:$true] %s48_s1  ;;  %s71_s5 = int_to_ptr.vmem [resolvable:$true] %s70_s5 }
  0x95   :  { %s2362_s7 = sld [smem:[#allocation35_spill]] }
  0x9b   :  { %s1574_s0 = scalar_lea.hbm %s2362_s7, 128 }
  0x9c   :  { %p1575_p6 = scmp.ne.s32.totalorder %s2362_s7, %s1574_s0  ;;  %p1578_p7 = scmp.lt.u32.totalorder %s1574_s0, %s2362_s7 }
  0x9e   :  { %p1580_p8 = pnand %p1578_p7, %p1575_p6 }
  0xa0   :  { %1583 = shalt.err (!%p1580_p8)
}
  0xa1   :  { %s1584_s16 = scalar_lea.vmem %s49_s1, 128  ;;  %p1589_p10 = scmp.lt.s32.totalorder %s49_s1, %s49_s1 }
  0xa2   :  { %p1585_p9 = scmp.ne.s32.totalorder %s49_s1, %s1584_s16  ;;  %p1590_p11 = scmp.lt.s32.totalorder %s1584_s16, %s1584_s16 }
  0xa4   :  { %p1591_p12 = por %p1590_p11, %p1589_p10 }
  0xa6   :  { %p1592_p13 = pnand %p1591_p12, %p1585_p9 }
  0xa8   :  { %1595 = shalt.err (!%p1592_p13)
}
  0xa9   :  { %51 = dma.hbm_to_vmem [thread:$0]  %s2362_s7, 128, %s49_s1, [#allocation3]  }
  0xaa   :  { %s2363_s11 = sld [smem:[#allocation38_spill]] }
  0xb0   :  { %s1596_s29 = scalar_lea.hbm %s2363_s11, 128 }
  0xb1   :  { %p1597_p0 = scmp.ne.s32.totalorder %s2363_s11, %s1596_s29  ;;  %p1600_p1 = scmp.lt.u32.totalorder %s1596_s29, %s2363_s11 }
  0xb3   :  { %p1602_p2 = pnand %p1600_p1, %p1597_p0 }
  0xb5   :  { %1605 = shalt.err (!%p1602_p2)
}
  0xb6   :  { %s1606_s9 = scalar_lea.vmem %s71_s5, 128  ;;  %p1611_p4 = scmp.lt.s32.totalorder %s71_s5, %s71_s5 }
  0xb7   :  { %p1607_p3 = scmp.ne.s32.totalorder %s71_s5, %s1606_s9  ;;  %p1612_p5 = scmp.lt.s32.totalorder %s1606_s9, %s1606_s9 }
  0xb9   :  { %p1613_p6 = por %p1612_p5, %p1611_p4 }
  0xbb   :  { %p1614_p7 = pnand %p1613_p6, %p1607_p3 }
  0xbd   :  { %1617 = shalt.err (!%p1614_p7)
}
  0xbe   :  { %73 = dma.hbm_to_vmem [thread:$0]  %s2363_s11, 128, %s71_s5, [#allocation6]  }
  0xbf   :  { %s1800_s2 = smov [#allocation10]   ;;  %s1801_s10 = smov [#allocation13]  }
  0xc0   :  { %s94_s3 = sshll.u32 %s1800_s2, 4  ;;  %s116_s16 = sshll.u32 %s1801_s10, 4  ;;  %s95_s3 = int_to_ptr.vmem [resolvable:$true] %s94_s3  ;;  %s117_s16 = int_to_ptr.vmem [resolvable:$true] %s116_s16 }
  0xc1   :  { %s2364_s27 = sld [smem:[#allocation41_spill]] }
  0xc7   :  { %s1618_s14 = scalar_lea.hbm %s2364_s27, 16 }
  0xc8   :  { %p1619_p8 = scmp.ne.s32.totalorder %s2364_s27, %s1618_s14  ;;  %p1622_p9 = scmp.lt.u32.totalorder %s1618_s14, %s2364_s27 }
  0xca   :  { %p1624_p10 = pnand %p1622_p9, %p1619_p8 }
  0xcc   :  { %1627 = shalt.err (!%p1624_p10)
}
  0xcd   :  { %s1628_s5 = scalar_lea.vmem %s95_s3, 16  ;;  %s1632_s11 = scalar_lea.vmem %s95_s3, 32 }
  0xce   :  { %p1629_p11 = scmp.ne.s32.totalorder %s95_s3, %s1628_s5  ;;  %p1633_p12 = scmp.lt.s32.totalorder %s95_s3, %s95_s3 }
  0xcf   :  { %p1634_p13 = scmp.lt.s32.totalorder %s1632_s11, %s1628_s5 }
  0xd1   :  { %p1635_p0 = por %p1634_p13, %p1633_p12 }
  0xd3   :  { %p1636_p1 = pnand %p1635_p0, %p1629_p11 }
  0xd5   :  { %1639 = shalt.err (!%p1636_p1)
}
  0xd6   :  { %97 = dma.hbm_to_vmem [thread:$0]  %s2364_s27, 16, %s95_s3, [#allocation9]  }
  0xd7   :  { %s2365_s2 = sld [smem:[#allocation44_spill]] }
  0xdd   :  { %s1640_s10 = scalar_lea.hbm %s2365_s2, 16 }
  0xde   :  { %p1641_p2 = scmp.ne.s32.totalorder %s2365_s2, %s1640_s10  ;;  %p1644_p3 = scmp.lt.u32.totalorder %s1640_s10, %s2365_s2 }
  0xe0   :  { %p1646_p4 = pnand %p1644_p3, %p1641_p2 }
  0xe2   :  { %1649 = shalt.err (!%p1646_p4)
}
  0xe3   :  { %s1650_s6 = scalar_lea.vmem %s117_s16, 16  ;;  %s1654_s8 = scalar_lea.vmem %s117_s16, 32 }
  0xe4   :  { %p1651_p5 = scmp.ne.s32.totalorder %s117_s16, %s1650_s6  ;;  %p1655_p6 = scmp.lt.s32.totalorder %s117_s16, %s117_s16 }
  0xe5   :  { %p1656_p7 = scmp.lt.s32.totalorder %s1654_s8, %s1650_s6 }
  0xe7   :  { %p1657_p8 = por %p1656_p7, %p1655_p6 }
  0xe9   :  { %p1658_p9 = pnand %p1657_p8, %p1651_p5 }
  0xeb   :  { %1661 = shalt.err (!%p1658_p9)
}
  0xec   :  { %119 = dma.hbm_to_vmem [thread:$0]  %s2365_s2, 16, %s117_s16, [#allocation12]  }
  0xed   :  { %s1802_s30 = smov [#allocation16]   ;;  %s1803_s11 = smov [#allocation19]  }
  0xee   :  { %s136_s5 = sshll.u32 %s1802_s30, 4  ;;  %s161_s0 = sshll.u32 %s1803_s11, 4  ;;  %s137_s5 = int_to_ptr.vmem [resolvable:$true] %s136_s5  ;;  %s2095_s0 = int_to_ptr.vmem [resolvable:$true] %s161_s0 }
  0xef   :  { %s2366_s7 = sld [smem:[#allocation46_spill]] }
  0xf5   :  { %s1662_s10 = scalar_lea.hbm %s2366_s7, 16 }
  0xf6   :  { %p1663_p10 = scmp.ne.s32.totalorder %s2366_s7, %s1662_s10  ;;  %p1666_p11 = scmp.lt.u32.totalorder %s1662_s10, %s2366_s7 }
  0xf8   :  { %p1668_p12 = pnand %p1666_p11, %p1663_p10 }
  0xfa   :  { %1671 = shalt.err (!%p1668_p12)
}
  0xfb   :  { %s1672_s16 = scalar_lea.vmem %s137_s5, 16  ;;  %s1676_s2 = scalar_lea.vmem %s137_s5, 32 }
  0xfc   :  { %p1673_p13 = scmp.ne.s32.totalorder %s137_s5, %s1672_s16  ;;  %p1677_p0 = scmp.lt.s32.totalorder %s137_s5, %s137_s5 }
  0xfd   :  { %p1678_p1 = scmp.lt.s32.totalorder %s1676_s2, %s1672_s16 }
  0xff   :  { %p1679_p2 = por %p1678_p1, %p1677_p0 }
 0x101   :  { %p1680_p3 = pnand %p1679_p2, %p1673_p13 }
 0x103   :  { %1683 = shalt.err (!%p1680_p3)
}
 0x104   :  { %139 = dma.hbm_to_vmem [thread:$0]  %s2366_s7, 16, %s137_s5, [#allocation15]  }
 0x105   :  { %s1684_s30 = scalar_lea.hbm %s2318_s15, 512 }
 0x106   :  { %p1685_p4 = scmp.ne.s32.totalorder %s2318_s15, %s1684_s30  ;;  %p1688_p5 = scmp.lt.u32.totalorder %s1684_s30, %s2318_s15 }
 0x108   :  { %p1690_p6 = pnand %p1688_p5, %p1685_p4 }
 0x10a   :  { %1693 = shalt.err (!%p1690_p6)
}
 0x10b   :  { %s1694_s26 = scalar_lea.vmem %s2095_s0, 512  ;;  %p1699_p8 = scmp.lt.s32.totalorder %s2095_s0, %s2095_s0 }
 0x10c   :  { %p1695_p7 = scmp.ne.s32.totalorder %s2095_s0, %s1694_s26  ;;  %p1700_p9 = scmp.lt.s32.totalorder %s1694_s26, %s1694_s26 }
 0x10e   :  { %p1701_p10 = por %p1700_p9, %p1699_p8 }
 0x110   :  { %p1702_p11 = pnand %p1701_p10, %p1695_p7 }
 0x112   :  { %1705 = shalt.err (!%p1702_p11)
}
 0x113   :  { %167 = dma.hbm_to_vmem [thread:$0]  %s2318_s15, 512, %s2095_s0, [#allocation18], %s1792_s4, %s1792_s4, %s1793_s28  }
 0x114   :  { %s1804_s25 = smov [#allocation22]   ;;  %s1706_s2 = scalar_lea.hbm %s2320_s17, 512 }
 0x115   :  { %s185_s14 = sshll.u32 %s1804_s25, 4  ;;  %p1707_p12 = scmp.ne.s32.totalorder %s2320_s17, %s1706_s2  ;;  %s186_s14 = int_to_ptr.vmem [resolvable:$true] %s185_s14 }
 0x116   :  { %p1710_p13 = scmp.lt.u32.totalorder %s1706_s2, %s2320_s17 }
 0x118   :  { %p1712_p0 = pnand %p1710_p13, %p1707_p12 }
 0x11a   :  { %1715 = shalt.err (!%p1712_p0)
}
 0x11b   :  { %s1716_s30 = scalar_lea.vmem %s186_s14, 512  ;;  %p1721_p2 = scmp.lt.s32.totalorder %s186_s14, %s186_s14 }
 0x11c   :  { %p1717_p1 = scmp.ne.s32.totalorder %s186_s14, %s1716_s30  ;;  %p1722_p3 = scmp.lt.s32.totalorder %s1716_s30, %s1716_s30 }
 0x11e   :  { %p1723_p4 = por %p1722_p3, %p1721_p2 }
 0x120   :  { %p1724_p5 = pnand %p1723_p4, %p1717_p1 }
 0x122   :  { %1727 = shalt.err (!%p1724_p5)
}
 0x123   :  { %191 = dma.hbm_to_vmem [thread:$0]  %s2320_s17, 512, %s186_s14, [#allocation21], %s1792_s4, %s1792_s4, %s1793_s28  }
 0x124   :  { %1772 = dma.done.wait [#allocation3], 128  }
 0x125   :  { %1773 = vsyncadd [#allocation3], 4294967168 }
 0x126   :  { %1774 = dma.done.wait [#allocation6], 256  }
 0x127   :  { %1775 = vsyncadd [#allocation6], 4294967040 }
 0x128   :  { %1776 = dma.done.wait [#allocation9], 272  }
 0x129   :  { %1777 = vsyncadd [#allocation9], 4294967024 }
 0x12a   :  { %1778 = dma.done.wait [#allocation12], 32  }
 0x12b   :  { %1779 = vsyncadd [#allocation12], 4294967264 }
 0x12c   :  { %1780 = dma.done.wait [#allocation15], 32  }
 0x12d   :  { %1781 = vsyncadd [#allocation15], 4294967264 }
 0x12e   :  { %1782 = dma.done.wait [#allocation18], 1024  }
 0x12f   :  { %1783 = vsyncadd [#allocation18], 4294966272 }
 0x130   :  { %1784 = dma.done.wait [#allocation21], 1024  }
 0x131   :  { %1785 = vsyncadd [#allocation21], 4294966272  ;;  %v1805_v0 = vmov 0.0|0.0   ;;  %vm1806_vm0 = vmmov 0   ;;  %v1807_v1 = vmov 0.0   ;;  %vm261_vm1 = vcmask 1043456  }
 0x132   :  { %1347 = vmatprep.subr.bf16.mxu0 %v1805_v0  ;;  %1351 = vmatprep.subr.bf16.mxu1 %v1805_v0  ;;  %v248_v2 = vld [vmem:[#allocation8] sm:$0xff]  ;;  %v249_v3 = vld [vmem:[#allocation8 + $0x8] sm:$0xf]  ;;  %vm1808_vm2 = vmmov 1   ;;  %vm257_vm4 = vcmask 97280   ;;  %s2367_s28 = sld [smem:[#allocation40_spill]] }
 0x133   :  { %1256 = vmatprep.mubr.msk.f32.mxu0 %vm1806_vm0, %v1807_v1  ;;  %1267 = vmatprep.mubr.msk.f32.mxu1 %vm1806_vm0, %v1807_v1  ;;  %vm1349_vm3 = vmpackc.low %vm261_vm1, %vm1808_vm2  ;;  %v1348_v4 = vpack.c.bf16 %v249_v3, %v248_v2  ;;  %v247_v5 = vld [vmem:[#allocation2] sm:$0xff]  ;;  %vm338_vm5 = vcmask 261120   ;;  %s2368_s1 = sld [smem:[#allocation43_spill]]  ;;  %v1187_v27 = vld [vmem:[#allocation10] ss:$0 sm:$0xff]  ;;  %s2369_s2 = sld [smem:[#allocation37_spill]] }
 0x134   :  { %v1188_v29 = vld [vmem:[#allocation11] ss:$0 sm:$0xff]  ;;  %v1189_v32 = vld [vmem:[#allocation13] ss:$0 sm:$0xff]  ;;  %v493_v39 = vld [vmem:[#allocation19] sm:$0xff]  ;;  %v1809_v41 = vmov 0  }
 0x135   :  { %1350 = vmatpush3.bf16.msk.msra.mxu0 %vm1349_vm3, %v1348_v4  ;;  %v494_v40 = vld [vmem:[#allocation19 + $0x8] sm:$0xff]  ;;  %1421 = vset.pattern.permute.xlu0 %v1809_v41  ;;  %v495_v48 = vld [vmem:[#allocation19 + $0x10] sm:$0xff]  ;;  %v496_v49 = vld [vmem:[#allocation19 + $0x18] sm:$0xff]  ;;  %s2370_s4 = sld [smem:[#allocation47_spill]]  ;;  %vm1105_vm7 = vcmask 39936  }
 0x136   :  { %1357 = vmatprep.subr.bf16.mxu0 %v1805_v0  ;;  %v1358_v42 = vpack.c.bf16 %v494_v40, %v493_v39  ;;  %v1361_v50 = vpack.c.bf16 %v496_v49, %v495_v48  ;;  %v481_v51 = vld [vmem:[#allocation5] sm:$0xff]  ;;  %v661_v53 = vld [vmem:[#allocation20] sm:$0xff]  ;;  %v662_v54 = vld [vmem:[#allocation20 + $0x8] sm:$0xff] }
 0x137   :  { %v1370_v56 = vpack.c.bf16 %v662_v54, %v661_v53  ;;  %v663_v57 = vld [vmem:[#allocation20 + $0x10] sm:$0xff]  ;;  %v664_v58 = vld [vmem:[#allocation20 + $0x18] sm:$0xff]  ;;  %v819_v63 = vld [vmem:[#allocation17] sm:$0xff] }
 0x138   :  { %1257 = vmatmul.mubr.msk.f32.vlgmr.msra.gmra.mrb[0].mxu0 %vm257_vm4, %v247_v5  ;;  %v1184_v6 = vld [vmem:[%s2367_s28] ss:$0 sm:$0xff]  ;;  %v1373_v59 = vpack.c.bf16 %v664_v58, %v663_v57  ;;  %v490_v61 = vld [vmem:[%s2315_s12 + $0x8] sm:$0xff]  ;;  %v491_v4 = vld [vmem:[%s2315_s12 + $0x10] sm:$0xff] }
 0x139   :  { %1278 = vmatprep.mubr.msk.f32.mxu0 %vm1806_vm0, %v1807_v1  ;;  %v367_v17 = vld [vmem:[%s2368_s1] sm:$0xff]  ;;  %v368_v18 = vld [vmem:[%s2368_s1 + $0x8] sm:$0xff]  ;;  %v369_v19 = vld [vmem:[%s2368_s1 + $0x10] sm:$0xff]  ;;  %1359 = vmatpush3.bf16.msra.mxu0 %v1358_v42 }
 0x13a   :  { %v1352_v20 = vpack.c.bf16 %v368_v18, %v367_v17  ;;  %v370_v21 = vld [vmem:[%s2368_s1 + $0x18] sm:$0xff]  ;;  %v482_v38 = vld [vmem:[%s2369_s2] sm:$0xff]  ;;  %1360 = vmatprep.subr.bf16.mxu0 %v1805_v0  ;;  %v658_v17 = vld [vmem:[%s2316_s13 + $0x8] sm:$0xff] }
 0x13b   :  { %v1355_v22 = vpack.c.bf16 %v370_v21, %v369_v19  ;;  %v489_v60 = vld [vmem:[%s2315_s12] sm:$0xff]  ;;  %v492_v5 = vld [vmem:[%s2315_s12 + $0x18] sm:$0xff]  ;;  %v1192_v18 = vld [vmem:[#allocation16] ss:$0 sm:$0xff] }
 0x13c   :  { %1353 = vmatpush3.bf16.msra.mxu1 %v1352_v20  ;;  %v1364_v62 = vpack.c.bf16 %v490_v61, %v489_v60  ;;  %v820_v2 = vld [vmem:[#allocation17 + $0x8] sm:$0xff] }
 0x13d   :  { %1354 = vmatprep.subr.bf16.mxu1 %v1805_v0  ;;  %1362 = vmatpush3.bf16.msra.mxu0 %v1361_v50  ;;  %v1382_v3 = vpack.c.bf16 %v820_v2, %v819_v63  ;;  %v1203_v53 = vld [vmem:[%s2324_s21] ss:$0 sm:$0xff] }
 0x13e   :  { %1369 = vmatprep.subr.bf16.mxu0 %v1805_v0 }
 0x140   :  { %1356 = vmatpush3.bf16.msra.mxu1 %v1355_v22  ;;  %v659_v22 = vld [vmem:[%s2316_s13 + $0x10] sm:$0xff] }
 0x141   :  { %1363 = vmatprep.subr.bf16.mxu1 %v1805_v0 }
 0x20b   :  { %v331_v7 = vpop.f32.mrb[0].mxu0 }
 0x20c   :  { %v332_v8 = vadd.f32 %v1184_v6, %v331_v7  ;;  %v1258_v9 = vpop.f32.mrb[1].mxu0  ;;  %v1367_v6 = vpack.c.bf16 %v492_v5, %v491_v4  ;;  %v821_v7 = vld [vmem:[#allocation17 + $0x10] sm:$0xff] }
 0x20e   :  { %v335_v10 = vmax.f32 %v332_v8, 0.0  ;;  %v822_v8 = vld [vmem:[#allocation17 + $0x18] sm:$0xff] }
 0x20f   :  { %v1385_v9 = vpack.c.bf16 %v822_v8, %v821_v7 }
 0x210   :  { %v339_v11 = vsel %vm338_vm5, %v335_v10, 0.0 }
 0x211   :  { %340 = vadd.xlane.f32.xlu0 %v339_v11 }
 0x29e   :  { %v341_v12 = vpop.xlane.xlu0 %340 }
 0x29f   :  { %v343_v13 = vmul.f32 0.03125, %v341_v12 }
 0x2a1   :  { %v344_v14 = vsub.f32 %v335_v10, %v343_v13 }
 0x2a3   :  { %v345_v15 = vmul.f32 %v344_v14, %v344_v14 }
 0x2a5   :  { %v346_v16 = vsel %vm338_vm5, %v345_v15, 0.0 }
 0x2a6   :  { %347 = vadd.xlane.f32.xlu0 %v346_v16  ;;  %v657_v16 = vld [vmem:[%s2316_s13] sm:$0xff] }
 0x2a7   :  { %v1376_v20 = vpack.c.bf16 %v658_v17, %v657_v16 }
 0x2bc   :  { %485 = vperm.xlu0 %1421, %v482_v38  }
 0x333   :  { %v348_v23 = vpop.xlane.xlu0 %347 }
 0x334   :  { %v349_v24 = vmul.f32 0.03125, %v348_v23  ;;  %v660_v23 = vld [vmem:[%s2316_s13 + $0x18] sm:$0xff] }
 0x336   :  { %v350_v25 = vadd.f32 1e-05, %v349_v24  ;;  %v1379_v24 = vpack.c.bf16 %v660_v23, %v659_v22  ;;  %v1206_v23 = vld [vmem:[%s2326_s23] ss:$0 sm:$0xff] }
 0x338   :  { %1422 = vrsqrt.f32 %v350_v25  ;;  %v900_v25 = vld [vmem:[#allocation22] sm:$0xff] }
 0x33b   :  { %v486_v52 = vpop.permute.xlu0 %485 }
 0x33c   :  { %v2182_v55 = vmul.f32 %v486_v52, %v481_v51 }
 0x33e   :  { %1279 = vmatmul.mubr.msk.f32.vlgmr.msra.gmra.mrb[2].mxu0 %vm338_vm5, %v2182_v55 }
 0x33f   :  { %1371 = vmatpush3.bf16.msra.mxu0 %v1370_v56  ;;  %1300 = vmatprep.mubr.msk.f32.mxu0 %vm1806_vm0, %v1807_v1  ;;  %v1201_v56 = vld [vmem:[%s2323_s20] ss:$0 sm:$0xff] }
 0x340   :  { %1372 = vmatprep.subr.bf16.mxu0 %v1805_v0 }
 0x342   :  { %v1423_v26 = vpop.eup %1422 }
 0x343   :  { %v352_v28 = vmul.f32 %v1423_v26, %v344_v14  ;;  %1374 = vmatpush3.bf16.msra.mxu0 %v1373_v59  ;;  %v1191_v14 = vld [vmem:[#allocation14] ss:$0 sm:$0xff]  ;;  %v901_v26 = vld [vmem:[#allocation22 + $0x8] sm:$0xff] }
 0x344   :  { %1381 = vmatprep.subr.bf16.mxu0 %v1805_v0 }
 0x345   :  { %v359_v30 = vmul.f32 %v1187_v27, %v352_v28  ;;  %v1388_v27 = vpack.c.bf16 %v901_v26, %v900_v25  ;;  %v902_v28 = vld [vmem:[#allocation22 + $0x10] sm:$0xff]  ;;  %v1207_v26 = vld [vmem:[%s2370_s4] ss:$0 sm:$0xff] }
 0x346   :  { %1301 = vmatmul.mubr.msk.f32.vlgmr.msra.gmra.mrb[4].mxu0 %vm338_vm5, %v2182_v55 }
 0x347   :  { %v366_v31 = vadd.f32 %v1188_v29, %v359_v30  ;;  %1383 = vmatpush3.bf16.msra.mxu0 %v1382_v3  ;;  %1322 = vmatprep.mubr.msk.f32.mxu0 %vm1806_vm0, %v1807_v1  ;;  %v903_v29 = vld [vmem:[#allocation22 + $0x18] sm:$0xff] }
 0x348   :  { %1384 = vmatprep.subr.bf16.mxu0 %v1805_v0  ;;  %v1391_v30 = vpack.c.bf16 %v903_v29, %v902_v28 }
 0x349   :  { %1268 = vmatmul.mubr.msk.f32.vlgmr.msra.gmra.mrb[0].mxu1 %vm338_vm5, %v366_v31 }
 0x34a   :  { %1289 = vmatprep.mubr.msk.f32.mxu1 %vm1806_vm0, %v1807_v1  ;;  %1365 = vmatpush3.bf16.msra.mxu1 %v1364_v62 }
 0x34b   :  { %1366 = vmatprep.subr.bf16.mxu1 %v1805_v0  ;;  %1386 = vmatpush3.bf16.msra.mxu0 %v1385_v9 }
 0x34c   :  { %1393 = vmatprep.subr.bf16.mxu0 %v1805_v0 }
 0x34e   :  { %1368 = vmatpush3.bf16.msra.mxu1 %v1367_v6 }
 0x34f   :  { %1375 = vmatprep.subr.bf16.mxu1 %v1805_v0 }
 0x411   :  { %v566_v31 = vpop.f32.mrb[2].mxu0 }
 0x41c   :  { %v447_v33 = vpop.f32.mrb[0].mxu1 }
 0x41d   :  { %v448_v34 = vadd.f32 %v1189_v32, %v447_v33  ;;  %v1269_v35 = vpop.f32.mrb[1].mxu1  ;;  %v1280_v32 = vpop.f32.mrb[3].mxu0 }
 0x41e   :  { %v731_v33 = vpop.f32.mrb[4].mxu0  ;;  %v1119_v32 = vlaneseq }
 0x41f   :  { %v451_v36 = vmax.f32 %v448_v34, 0.0  ;;  %v1302_v34 = vpop.f32.mrb[5].mxu0 }
 0x421   :  { %v454_v37 = vsel %vm338_vm5, %v451_v36, 0.0 }
 0x422   :  { %455 = vadd.xlane.f32.xlu1 %v454_v37 }
 0x4af   :  { %v456_v43 = vpop.xlane.xlu1 %455 }
 0x4b0   :  { %v457_v44 = vmul.f32 0.03125, %v456_v43  ;;  %v1199_v43 = vld [vmem:[%s2322_s19] ss:$0 sm:$0xff] }
 0x4b2   :  { %v458_v45 = vsub.f32 %v451_v36, %v457_v44  ;;  %v1195_v36 = vld [vmem:[%s2321_s18] ss:$0 sm:$0xff] }
 0x4b4   :  { %v459_v46 = vmul.f32 %v458_v45, %v458_v45 }
 0x4b6   :  { %v460_v47 = vsel %vm338_vm5, %v459_v46, 0.0 }
 0x4b7   :  { %461 = vadd.xlane.f32.xlu1 %v460_v47 }
 0x544   :  { %v462_v10 = vpop.xlane.xlu1 %461 }
 0x545   :  { %v463_v11 = vmul.f32 0.03125, %v462_v10 }
 0x547   :  { %v464_v12 = vadd.f32 1e-05, %v463_v11 }
 0x549   :  { %1424 = vrsqrt.f32 %v464_v12  ;;  %v1018_v12 = vld [vmem:[%s2327_s24] sm:$0xff] }
 0x553   :  { %v1425_v13 = vpop.eup %1424 }
 0x554   :  { %v466_v15 = vmul.f32 %v1425_v13, %v458_v45 }
 0x556   :  { %v473_v19 = vmul.f32 %v1191_v14, %v466_v15  ;;  %v1020_v14 = vld [vmem:[%s2327_s24 + $0x10] sm:$0xff]  ;;  %v1021_v15 = vld [vmem:[%s2327_s24 + $0x18] sm:$0xff] }
 0x557   :  { %v1397_v16 = vpack.c.bf16 %v1021_v15, %v1020_v14 }
 0x558   :  { %v480_v21 = vadd.f32 %v1192_v18, %v473_v19 }
 0x55a   :  { %1290 = vmatmul.mubr.msk.f32.vlgmr.msra.gmra.mrb[2].mxu1 %vm338_vm5, %v480_v21  ;;  %1323 = vmatmul.mubr.msk.f32.vlgmr.msra.gmra.mrb[6].mxu0 %vm338_vm5, %v480_v21 }
 0x55b   :  { %1377 = vmatpush3.bf16.msra.mxu1 %v1376_v20  ;;  %1311 = vmatprep.mubr.msk.f32.mxu1 %vm1806_vm0, %v1807_v1 }
 0x55c   :  { %1378 = vmatprep.subr.bf16.mxu1 %v1805_v0  ;;  %1344 = vmatprep.mubr.msk.f32.mxu0 %vm1806_vm0, %v1807_v1 }
 0x55f   :  { %1380 = vmatpush3.bf16.msra.mxu1 %v1379_v24 }
 0x560   :  { %1387 = vmatprep.subr.bf16.mxu1 %v1805_v0 }
 0x562   :  { %1312 = vmatmul.mubr.msk.f32.vlgmr.msra.gmra.mrb[4].mxu1 %vm338_vm5, %v480_v21  ;;  %v1205_v21 = vld [vmem:[%s2325_s22] ss:$0 sm:$0xff]  ;;  %s1810_s22 = smov [#allocation24]  }
 0x563   :  { %1389 = vmatpush3.bf16.msra.mxu1 %v1388_v27  ;;  %1333 = vmatprep.mubr.msk.f32.mxu1 %vm1806_vm0, %v1807_v1  ;;  %s1165_s23 = sshll.u32 %s1810_s22, 4  ;;  %s1166_s23 = int_to_ptr.vmem [resolvable:$true] %s1165_s23 }
 0x564   :  { %1390 = vmatprep.subr.bf16.mxu1 %v1805_v0  ;;  %s1728_s28 = scalar_lea.vmem %s1166_s23, 128  ;;  %p1733_p7 = scmp.lt.s32.totalorder %s1166_s23, %s1166_s23 }
 0x565   :  { %p1729_p6 = scmp.ne.s32.totalorder %s1166_s23, %s1728_s28  ;;  %p1734_p8 = scmp.lt.s32.totalorder %s1728_s28, %s1728_s28 }
 0x567   :  { %1392 = vmatpush3.bf16.msra.mxu1 %v1391_v30  ;;  %p1735_p9 = por %p1734_p8, %p1733_p7 }
 0x569   :  { %p1736_p10 = pnand %p1735_p9, %p1729_p6 }
 0x56a   :  { %1334 = vmatmul.mubr.msk.f32.vlgmr.msra.gmra.mrb[6].mxu1 %vm338_vm5, %v2182_v55 }
 0x62d   :  { %v639_v35 = vpop.f32.mrb[2].mxu1  ;;  %v896_v37 = vpop.f32.mrb[6].mxu0 }
 0x62e   :  { %v640_v38 = vadd.f32 %v639_v35, %v566_v31  ;;  %v1291_v39 = vpop.f32.mrb[3].mxu1  ;;  %v1324_v40 = vpop.f32.mrb[7].mxu0  ;;  %v897_v59 = vadd.f32 %v1201_v56, %v896_v37 }
 0x630   :  { %v650_v1 = vadd.f32 %v1195_v36, %v640_v38 }
 0x632   :  { %v1196_v41 = vmul.f32 -1.442695, %v650_v1 }
 0x634   :  { %1426 = vpow2.f32 %v1196_v41 }
 0x635   :  { %v801_v42 = vpop.f32.mrb[4].mxu1 }
 0x636   :  { %v802_v44 = vadd.f32 %v801_v42, %v731_v33  ;;  %v1313_v45 = vpop.f32.mrb[5].mxu1  ;;  %v1120_v33 = vand.u32 127, %v1119_v32 }
 0x638   :  { %v812_v46 = vadd.f32 %v1199_v43, %v802_v44 }
 0x63a   :  { %v1200_v47 = vmul.f32 -1.442695, %v812_v46 }
 0x63c   :  { %1428 = vpow2.f32 %v1200_v47 }
 0x63d   :  { %v977_v48 = vpop.f32.mrb[6].mxu1 }
 0x63e   :  { %v1427_v49 = vpop.eup %1426  ;;  %v1335_v50 = vpop.f32.mrb[7].mxu1  ;;  %v978_v57 = vadd.f32 %v1203_v53, %v977_v48 }
 0x63f   :  { %v654_v51 = vadd.f32 1.0, %v1427_v49 }
 0x641   :  { %1430 = vrcp.f32 %v654_v51 }
 0x646   :  { %v1429_v52 = vpop.eup %1428 }
 0x647   :  { %v816_v54 = vadd.f32 1.0, %v1429_v52 }
 0x649   :  { %1432 = vrcp.f32 %v816_v54 }
 0x64b   :  { %v1431_v58 = vpop.eup %1430 }
 0x64c   :  { %v981_v60 = vmul.f32 %v1431_v58, %v978_v57 }
 0x64e   :  { %v982_v61 = vadd.f32 %v981_v60, %v897_v59 }
 0x650   :  { %1434 = vtanh.f32 %v982_v61 }
 0x653   :  { %v1433_v62 = vpop.eup %1432 }
 0x654   :  { %v984_v63 = vsub.f32 1.0, %v1433_v62  ;;  %v986_v4 = vmul.f32 %v1433_v62, %v2182_v55  ;;  %v1019_v55 = vld [vmem:[%s2327_s24 + $0x8] sm:$0xff] }
 0x655   :  { %v1394_v13 = vpack.c.bf16 %v1019_v55, %v1018_v12 }
 0x657   :  { %1395 = vmatpush3.bf16.msra.mxu0 %v1394_v13 }
 0x658   :  { %1396 = vmatprep.subr.bf16.mxu0 %v1805_v0  ;;  %v1102_v0 = vld [vmem:[#allocation7] sm:$0xff] }
 0x659   :  { %vm1103_vm6 = vcmp.gt.f32.partialorder %v1102_v0, 0.5 }
 0x65a   :  { %v1435_v2 = vpop.eup %1434 }
 0x65b   :  { %v985_v3 = vmul.f32 %v1435_v2, %v984_v63  ;;  %1398 = vmatpush3.bf16.msra.mxu0 %v1397_v16 }
 0x65d   :  { %v987_v5 = vadd.f32 %v986_v4, %v985_v3 }
 0x65f   :  { %v991_v6 = vsel %vm338_vm5, %v987_v5, 0.0  ;;  %988 = vst.msk [vmem:[#allocation24] sm:$0xff] %vm338_vm5, %v987_v5 }
 0x660   :  { %992 = vadd.xlane.f32.xlu1 %v991_v6 }
 0x6ed   :  { %v993_v7 = vpop.xlane.xlu1 %992 }
 0x6ee   :  { %v994_v8 = vmul.f32 0.03125, %v993_v7 }
 0x6f0   :  { %v995_v9 = vsub.f32 %v987_v5, %v994_v8 }
 0x6f2   :  { %v996_v10 = vmul.f32 %v995_v9, %v995_v9 }
 0x6f4   :  { %v997_v11 = vsel %vm338_vm5, %v996_v10, 0.0 }
 0x6f5   :  { %998 = vadd.xlane.f32.xlu1 %v997_v11 }
 0x782   :  { %v999_v17 = vpop.xlane.xlu1 %998 }
 0x783   :  { %v1000_v18 = vmul.f32 0.03125, %v999_v17 }
 0x785   :  { %v1001_v19 = vadd.f32 1e-05, %v1000_v18 }
 0x787   :  { %1436 = vrsqrt.f32 %v1001_v19 }
 0x791   :  { %v1437_v20 = vpop.eup %1436 }
 0x792   :  { %v1003_v22 = vmul.f32 %v1437_v20, %v995_v9 }
 0x794   :  { %v1010_v24 = vmul.f32 %v1205_v21, %v1003_v22 }
 0x796   :  { %v1017_v25 = vadd.f32 %v1206_v23, %v1010_v24 }
 0x798   :  { %1345 = vmatmul.mubr.msk.f32.vlgmr.msra.gmra.mrb[8].mxu0 %vm338_vm5, %v1017_v25 }
 0x86b   :  { %v1098_v27 = vpop.f32.mrb[8].mxu0 }
 0x86c   :  { %v1099_v28 = vadd.f32 %v1207_v26, %v1098_v27  ;;  %v1346_v29 = vpop.f32.mrb[9].mxu0 }
 0x86e   :  { %v1104_v30 = vsel %vm1103_vm6, %v1099_v28, -1e+10 }
 0x86f   :  { %v1106_v31 = vsel %vm1105_vm7, %v1104_v30, -inf }
 0x870   :  { %1107 = vmax.xlane.f32.xlu1 %v1106_v31 }
 0x8fd   :  { %v1108_v34 = vpop.xlane.xlu1 %1107 }
 0x8fe   :  { %v1109_v35 = vsub.f32 %v1104_v30, %v1108_v34  ;;  %vm1121_vm8 = vcmp.ge.f32.partialorder %v1104_v30, %v1108_v34 }
 0x8ff   :  { %v1122_v36 = vsel %vm1121_vm8, %v1120_v33, 5 }
 0x900   :  { %v1110_v37 = vmul.f32 1.442695, %v1109_v35  ;;  %v1123_v38 = vsel %vm1105_vm7, %v1122_v36, 2147483647 }
 0x901   :  { %v1125_v39 = vshra.s32 %v1123_v38, 16  ;;  %v1124_v42 = vand.u32 65535, %v1123_v38 }
 0x902   :  { %1438 = vpow2.f32 %v1110_v37 }
 0x903   :  { %v1127_v40 = vcvt.s32.f32 %v1125_v39  ;;  %v1126_v44 = vcvt.s32.f32 %v1124_v42 }
 0x905   :  { %1128 = vmin.xlane.f32.xlu1 %v1127_v40 }
 0x90c   :  { %v1439_v1 = vpop.eup %1438 }
 0x90d   :  { %v1112_v41 = vsel %vm1105_vm7, %v1439_v1, 0.0 }
 0x90e   :  { %1113 = vadd.xlane.f32.xlu1 %v1112_v41 }
 0x992   :  { %v1129_v43 = vpop.xlane.xlu1 %1128 }
 0x993   :  { %vm1130_vm9 = vcmp.eq.f32.partialorder %v1127_v40, %v1129_v43  ;;  %v1135_v49 = vcvt.f32.s32 %v1129_v43 }
 0x994   :  { %v1131_v45 = vsel %vm1130_vm9, %v1126_v44, inf }
 0x995   :  { %1132 = vmin.xlane.f32.xlu1 %v1131_v45  ;;  %v1136_v52 = vshll.u32 %v1135_v49, 16 }
 0x99b   :  { %v1114_v46 = vpop.xlane.xlu1 %1113 }
 0x99c   :  { %1440 = vlog2.f32 %v1114_v46 }
 0x9a6   :  { %v1441_v47 = vpop.eup %1440 }
 0x9a7   :  { %v1116_v48 = vmul.f32 0.6931472, %v1441_v47 }
 0x9a9   :  { %v1117_v50 = vadd.f32 %v1116_v48, %v1108_v34 }
 0x9ab   :  { %v1118_v56 = vsub.f32 %v1104_v30, %v1117_v50 }
 0xa22   :  { %v1133_v51 = vpop.xlane.xlu1 %1132 }
 0xa23   :  { %v1134_v53 = vcvt.f32.s32 %v1133_v51 }
 0xa25   :  { %v1137_v54 = vadd.s32 %v1136_v52, %v1134_v53 }
 0xa27   :  { %vm1138_vm10 = vcmp.eq.s32.totalorder %v1120_v33, %v1137_v54 }
 0xa28   :  { %v1139_v57 = vsel %vm1138_vm10, %v1118_v56, 0.0 }
 0xa29   :  { %v1140_v58 = vsel %vm1105_vm7, %v1139_v57, 0.0 }
 0xa2a   :  { %1141 = vadd.xlane.f32.xlu1 %v1140_v58 }
 0xa2b   :  { %1739 = shalt.err (!%p1736_p10)
}
 0xa2c   :  { %s2371_s1 = sld [smem:[#allocation49_spill]] }
 0xa32   :  { %s1740_s10 = scalar_lea.hbm %s2371_s1, 128 }
 0xa33   :  { %p1741_p11 = scmp.ne.s32.totalorder %s2371_s1, %s1740_s10  ;;  %p1744_p12 = scmp.lt.u32.totalorder %s1740_s10, %s2371_s1 }
 0xa35   :  { %p1746_p13 = pnand %p1744_p12, %p1741_p11 }
 0xa37   :  { %1749 = shalt.err (!%p1746_p13)
}
 0xa38   :  { %1168 = dma.vmem_to_hbm [thread:$0]  %s1166_s23, 128, %s2371_s1, [#allocation25]   ;;  %vm1145_vm11 = vcmp.eq.s32.totalorder %v1120_v33, 1  ;;  %vm1143_vm12 = vcmp.eq.s32.totalorder %v1120_v33, 0  ;;  %v1144_v59 = vcvt.s32.f32 %v1137_v54 }
 0xa39   :  { %s1811_s14 = smov [#allocation23]  }
 0xa3a   :  { %s1155_s29 = sshll.u32 %s1811_s14, 4  ;;  %s1156_s29 = int_to_ptr.vmem [resolvable:$true] %s1155_s29 }
 0xa3b   :  { %s1750_s16 = scalar_lea.vmem %s1156_s29, 128  ;;  %p1755_p1 = scmp.lt.s32.totalorder %s1156_s29, %s1156_s29 }
 0xa3c   :  { %p1751_p0 = scmp.ne.s32.totalorder %s1156_s29, %s1750_s16  ;;  %p1756_p2 = scmp.lt.s32.totalorder %s1750_s16, %s1750_s16 }
 0xa3e   :  { %p1757_p3 = por %p1756_p2, %p1755_p1 }
 0xa40   :  { %p1758_p4 = pnand %p1757_p3, %p1751_p0 }
 0xab7   :  { %v1142_v60 = vpop.xlane.xlu1 %1141 }
 0xab8   :  { %v1146_v61 = vsel %vm1145_vm11, %v1142_v60, 0.0 }
 0xab9   :  { %v1147_v62 = vsel %vm1143_vm12, %v1144_v59, %v1146_v61 }
 0xaba   :  { %1148 = vst [vmem:[#allocation23] sm:$0xff] %v1147_v62 }
 0xabb   :  { %1761 = shalt.err (!%p1758_p4)
}
 0xabc   :  { %s2372_s21 = sld [smem:[#allocation48_spill]] }
 0xac2   :  { %s1762_s2 = scalar_lea.hbm %s2372_s21, 128 }
 0xac3   :  { %p1763_p5 = scmp.ne.s32.totalorder %s2372_s21, %s1762_s2  ;;  %p1766_p6 = scmp.lt.u32.totalorder %s1762_s2, %s2372_s21 }
 0xac5   :  { %p1768_p7 = pnand %p1766_p6, %p1763_p5 }
 0xac7   :  { %1771 = shalt.err (!%p1768_p7)
}
 0xac8   :  { %1158 = dma.vmem_to_hbm [thread:$0]  %s1156_s29, 128, %s2372_s21, [#allocation4]  }
 0xac9   :  { %1786 = dma.done.wait [#allocation4], 128  }
 0xaca   :  { %1787 = vsyncadd [#allocation4], 4294967168 }
 0xacb   :  { %1788 = dma.done.wait [#allocation25], 128  }
 0xacc   :  { %1789 = vsyncadd [#allocation25], 4294967168 }
 0xacd   :  { %1175 = vsyncpa [#allocation3], 1 }
 0xace   :  { %1176 = vsyncpa [#allocation6], 1 }
 0xacf   :  { %1177 = vsyncpa [#allocation9], 1 }
 0xad0   :  { %1178 = vsyncpa [#allocation12], 1 }
 0xad1   :  { %1179 = vsyncpa [#allocation15], 1 }
 0xad2   :  { %1180 = vsyncpa [#allocation18], 1 }
 0xad3   :  { %1181 = vsyncpa [#allocation21], 1 }
 0xad4   :  { %1182 = vsyncpa [#allocation4], 1 }
 0xad5   :  { %1183 = vsyncpa [#allocation25], 1 }

</bundles_post_ra>
